<compile_context>
chip_gen: v5e
topology: v5e:2x2
jax: 0.10.0
libtpu: 0.0.40
codegen_flags: <defaults>
</compile_context>

<pallas_src>
import functools
import math

import jax
import jax.numpy as jnp
from jax import lax
from jax.experimental import pallas as pl
from jax.experimental.pallas import tpu as pltpu


def _round_up(x, m):
    return (x + m - 1) // m * m


def _pad_axis(x, axis, target):
    cur = x.shape[axis]
    if cur == target:
        return x
    pad = [(0, 0)] * x.ndim
    pad[axis] = (0, target - cur)
    return jnp.pad(x, pad)


def _fast_recip(x):
    # EUP approximate reciprocal + two Newton refinements on a (tL, 1) vector:
    # routes the divide off the VALU while keeping ~f32 accuracy.
    r = pl.reciprocal(x, approx=True)
    r = r * (2.0 - x * r)
    r = r * (2.0 - x * r)
    return r


def _anomaly_attn_kernel(*refs, scale, mask_flag, s_valid, H, E, D,
                         out_attn, mm_dtype):
    if out_attn:
        (q_ref, k_ref, v_ref, sig_ref,
         vout_ref, series_ref, prior_ref, sigout_ref) = refs
    else:
        q_ref, k_ref, v_ref, vout_ref = refs

    tL = q_ref.shape[1]
    Skv = k_ref.shape[1]
    row0 = pl.program_id(1) * tL

    rows = row0 + lax.broadcasted_iota(jnp.int32, (tL, 1), 0)     # (tL, 1)
    cols = lax.broadcasted_iota(jnp.int32, (1, Skv), 1)           # (1, Skv)

    # Single combined invalid-key mask: padded key columns | strict upper tri.
    bad = None
    if s_valid < Skv:
        bad = cols >= s_valid                                     # (1, Skv)
    if mask_flag:
        causal = cols > rows                                      # (tL, Skv)
        bad = causal if bad is None else (causal | bad)

    if out_attn:
        # |i - j|^2 shared by all heads (computed once per (b, l-tile)).
        diff = (rows - cols).astype(jnp.float32)                  # (tL, Skv)
        diff2 = diff * diff

    neg_inf = jnp.float32(-jnp.inf)
    f32 = jnp.float32
    exact_mm = jnp.dtype(mm_dtype) == jnp.dtype(jnp.float32)
    prec = lax.Precision.HIGHEST if exact_mm else None

    for h in range(H):                                            # static unroll
        # ---- prior / sigma path (independent of the matmuls) ----
        if out_attn:
            sig = sig_ref[0, :, h:h + 1].astype(f32)              # (tL, 1)
            s1 = jax.nn.sigmoid(sig * 5.0) + 1e-5
            s2 = jnp.exp(s1 * math.log(3.0)) - 1.0                # 3 ** s1 - 1
            inv_sig = _fast_recip(s2)                             # (tL, 1)
            coef = inv_sig * (1.0 / math.sqrt(2.0 * math.pi))
            neg_half_inv_var = (-0.5) * (inv_sig * inv_sig)
            prior_ref[0, h] = (coef * jnp.exp(diff2 * neg_half_inv_var)
                               ).astype(prior_ref.dtype)
            sigout_ref[0, h] = s2.astype(sigout_ref.dtype)

        # ---- attention path: scale folded into q, bf16 MXU operands ----
        q_h = (q_ref[0, :, h * E:(h + 1) * E].astype(f32) * scale).astype(mm_dtype)
        k_h = k_ref[0, :, h * E:(h + 1) * E].astype(mm_dtype)
        scores = lax.dot_general(q_h, k_h, (((1,), (1,)), ((), ())),
                                 preferred_element_type=jnp.float32,
                                 precision=prec)                  # (tL, Skv) f32
        if bad is not None:
            scores = jnp.where(bad, neg_inf, scores)

        m = jnp.max(scores, axis=-1, keepdims=True)
        e = jnp.exp(scores - m)
        inv_denom = _fast_recip(jnp.sum(e, axis=-1, keepdims=True))
        series = e * inv_denom                                    # (tL, Skv)

        if out_attn:
            series_ref[0, h] = series.astype(series_ref.dtype)

        v_h = v_ref[0, :, h * D:(h + 1) * D].astype(mm_dtype)
        pv = lax.dot_general(series.astype(mm_dtype), v_h,
                             (((1,), (0,)), ((), ())),
                             preferred_element_type=jnp.float32,
                             precision=prec)                      # (tL, D) f32
        vout_ref[0, :, h * D:(h + 1) * D] = pv.astype(vout_ref.dtype)


def anomaly_attention(queries, keys, values, sigma, *,
                      mask_flag=True, scale=None, output_attention=False,
                      block_l=None, mxu_dtype=jnp.bfloat16,
                      attn_dtype=jnp.float32):
    """JAX/Pallas equivalent of AnomalyAttention.forward (dropout p = 0).

    queries: (B, L, H, E), keys: (B, S, H, E), values: (B, S, H, D),
    sigma: (B, L, H).  Returns (V, None) or (V, series, prior, sigma_rep).
    """
    B, L, H, E = queries.shape
    _, S, _, D = values.shape
    # `scale or 1/sqrt(E)` semantics (None OR 0.0 -> default), like the module.
    scale_val = float(scale) if scale else 1.0 / math.sqrt(E)
    if mask_flag and scale_val < 0.0:
        # The module masks with -inf *before* scaling; that only survives a
        # non-negative scale.
        raise ValueError("mask_flag=True requires a non-negative scale.")

    in_dt = queries.dtype
    ib = jnp.dtype(in_dt).itemsize
    ab = jnp.dtype(attn_dtype).itemsize
    HE, HD = H * E, H * D

    # ---- generation-aware VMEM budget ----
    try:
        vmem_cap = int(getattr(pltpu.get_tpu_info(), "vmem_capacity_bytes"))
    except Exception:                                   # pragma: no cover
        vmem_cap = 64 << 20                             # conservative (v7x)

    # Lane-dense (.., L, S) stores only matter when the attention maps are
    # emitted; the V-only path skips the S pad (and its K/V copy).
    Skv = _round_up(S, 128) if output_attention else S

    if block_l is None:
        block_l = 512 if vmem_cap >= (96 << 20) else 128
    tL = _round_up(min(int(block_l), _round_up(L, 8)), 8)

    def _step_bytes(t, kv_buf):
        ins = 2 * t * HE * ib + kv_buf * Skv * (HE + HD) * ib
        outs = 2 * t * HD * ib
        if output_attention:
            ins += 2 * t * H * ib                                   # sigma
            outs += 2 * (2 * H * t * Skv * ab + H * t * 4)          # series/prior/sig col
        temps = (7 if output_attention else 5) * t * Skv * 4        # in-kernel (tL,S) temps
        return ins + outs + temps

    budget = int(0.70 * vmem_cap)
    kv_buf = 2
    if vmem_cap <= (72 << 20) and _step_bytes(tL, 2) > budget:
        kv_buf = 1      # single-buffer the L-invariant K/V blocks on v7x-sized VMEM
    while tL > 8 and _step_bytes(tL, kv_buf) > budget:
        tL = max(8, _round_up(tL // 2, 8))

    Lp = _round_up(L, tL)
    nL = Lp // tL
    vmem_limit = int(min(int(0.90 * vmem_cap),
                         max(32 << 20, _step_bytes(tL, kv_buf) + (8 << 20))))

    # ---- transpose-free layouts: collapse (H, E) / (H, D) minor dims (free) ----
    q = _pad_axis(queries.reshape(B, L, HE), 1, Lp)                 # (B, Lp, H*E)
    k = _pad_axis(keys.reshape(B, S, HE), 1, Skv)                   # (B, Skv, H*E)
    v = _pad_axis(values.reshape(B, S, HD), 1, Skv)                 # (B, Skv, H*D)

    kv_mode = {"pipeline_mode": pl.Buffered(1)} if kv_buf == 1 else {}
    in_specs = [
        pl.BlockSpec((1, tL, HE), lambda b, l: (b, l, 0)),
        pl.BlockSpec((1, Skv, HE), lambda b, l: (b, 0, 0), **kv_mode),
        pl.BlockSpec((1, Skv, HD), lambda b, l: (b, 0, 0), **kv_mode),
    ]
    inputs = [q, k, v]

    out_shapes = [jax.ShapeDtypeStruct((B, Lp, HD), in_dt)]
    out_specs = [pl.BlockSpec((1, tL, HD), lambda b, l: (b, l, 0))]
    if output_attention:
        sg = _pad_axis(sigma, 1, Lp)                                # (B, Lp, H)
        in_specs.append(pl.BlockSpec((1, tL, H), lambda b, l: (b, l, 0)))
        inputs.append(sg)
        out_shapes += [jax.ShapeDtypeStruct((B, H, Lp, Skv), attn_dtype),   # series
                       jax.ShapeDtypeStruct((B, H, Lp, Skv), attn_dtype),   # prior
                       jax.ShapeDtypeStruct((B, H, Lp, 1), jnp.float32)]    # sigma col
        out_specs += [pl.BlockSpec((1, H, tL, Skv), lambda b, l: (b, 0, l, 0)),
                      pl.BlockSpec((1, H, tL, Skv), lambda b, l: (b, 0, l, 0)),
                      pl.BlockSpec((1, H, tL, 1), lambda b, l: (b, 0, l, 0))]

    kernel = functools.partial(
        _anomaly_attn_kernel, scale=scale_val, mask_flag=bool(mask_flag),
        s_valid=S, H=H, E=E, D=D, out_attn=bool(output_attention),
        mm_dtype=mxu_dtype)

    outs = pl.pallas_call(
        kernel,
        out_shape=tuple(out_shapes),
        grid=(B, nL),
        in_specs=in_specs,
        out_specs=tuple(out_specs),
        compiler_params=pltpu.CompilerParams(
            dimension_semantics=("parallel", "parallel"),
            vmem_limit_bytes=vmem_limit),
    )(*inputs)
    if not isinstance(outs, (tuple, list)):
        outs = (outs,)

    V = outs[0][:, :L, :].reshape(B, L, H, D)           # free reshape, no transpose

    if not output_attention:
        return V, None

    series = outs[1][:, :, :L, :S]
    prior = outs[2][:, :, :L, :S]
    sig_rep = jnp.broadcast_to(outs[3][:, :, :L, :], (B, H, L, S)).astype(jnp.float32)
    return V, series, prior, sig_rep


def _reference(queries, keys, values, sigma, *, mask_flag=True, scale=None):
    """Pure-JAX mirror of the PyTorch forward (for correctness check)."""
    B, L, H, E = queries.shape
    _, S, _, D = values.shape
    scale = scale or 1.0 / math.sqrt(E)
    scores = jnp.einsum('blhe,bshe->bhls', queries, keys,
                        precision=lax.Precision.HIGHEST)
    if mask_flag:
        mask = jnp.triu(jnp.ones((L, L), dtype=bool), k=1)
        scores = jnp.where(mask[None, None], -jnp.inf, scores)
    attn = scale * scores
    sig = jnp.transpose(sigma, (0, 2, 1))
    sig = jax.nn.sigmoid(sig * 5.0) + 1e-5
    sig = jnp.power(3.0, sig) - 1.0
    sig = jnp.repeat(sig[..., None], S, axis=-1)
    idx = jnp.arange(L, dtype=jnp.float32)
    dist = jnp.abs(idx[:, None] - idx[None, :])
    prior = 1.0 / (math.sqrt(2.0 * math.pi) * sig) * jnp.exp(-dist ** 2 / 2.0 / sig ** 2)
    series = jax.nn.softmax(attn, axis=-1)
    V = jnp.einsum('bhls,bshd->blhd', series, values,
                   precision=lax.Precision.HIGHEST)
    return V, series, prior, sig


if __name__ == "__main__":
    base_key = jax.random.PRNGKey(0)

    def make_inputs(B, L, H, E, seed):
        S, D = L, E
        key = jax.random.fold_in(base_key, seed)
        kq, kk, kv, ks = jax.random.split(key, 4)
        queries = jax.random.normal(kq, (B, L, H, E), dtype=jnp.float32)
        keys = jax.random.normal(kk, (B, S, H, E), dtype=jnp.float32)
        values = jax.random.normal(kv, (B, S, H, D), dtype=jnp.float32)
        sigma = jax.random.normal(ks, (B, L, H), dtype=jnp.float32)
        return queries, keys, values, sigma

    def check(B, L, H, E, mask_flag, seed, test_f32=False, test_bf16_attn=False):
        queries, keys, values, sigma = make_inputs(B, L, H, E, seed)
        Vr, seriesr, priorr, sigr = _reference(
            queries, keys, values, sigma, mask_flag=mask_flag)

        if test_f32:
            # exact-precision variant (f32 MXU) — tight tolerances
            V, series, prior, sig_rep = anomaly_attention(
                queries, keys, values, sigma, mask_flag=mask_flag,
                output_attention=True, mxu_dtype=jnp.float32)
            jax.block_until_ready((V, series, prior, sig_rep))
            assert jnp.allclose(V, Vr, atol=5e-3, rtol=5e-3), "V (f32) mismatch"
            assert jnp.allclose(series, seriesr, atol=2e-3, rtol=1e-3), "series (f32) mismatch"
            assert jnp.allclose(prior, priorr, atol=1e-3, rtol=5e-3), "prior (f32) mismatch"
            assert jnp.allclose(sig_rep, sigr, atol=1e-5, rtol=1e-4), "sigma mismatch"

        # fast default (bf16 MXU operands, f32 accumulation) — looser tolerances
        Vb, seriesb, priorb, sigb = anomaly_attention(
            queries, keys, values, sigma, mask_flag=mask_flag, output_attention=True)
        jax.block_until_ready((Vb, seriesb, priorb, sigb))
        assert jnp.allclose(Vb, Vr, atol=7e-2, rtol=5e-2), "V (bf16 mxu) mismatch"
        assert jnp.allclose(seriesb, seriesr, atol=5e-2, rtol=5e-2), "series (bf16 mxu) mismatch"
        assert jnp.allclose(priorb, priorr, atol=1e-3, rtol=5e-3), "prior (bf16 mxu) mismatch"
        assert jnp.allclose(sigb, sigr, atol=1e-5, rtol=1e-4), "sigma (bf16 mxu) mismatch"

        if test_bf16_attn:
            # bf16 attention-map outputs (halves the dominant HBM writes)
            Vh, seriesh, priorh, _ = anomaly_attention(
                queries, keys, values, sigma, mask_flag=mask_flag,
                output_attention=True, attn_dtype=jnp.bfloat16)
            jax.block_until_ready((Vh, seriesh, priorh))
            assert jnp.allclose(seriesh.astype(jnp.float32), seriesr,
                                atol=6e-2, rtol=6e-2), "series (bf16 out) mismatch"

        # V-only path (output_attention=False): no sigma read, no map writes
        V0, attn_none = anomaly_attention(
            queries, keys, values, sigma, mask_flag=mask_flag, output_attention=False)
        jax.block_until_ready(V0)
        assert attn_none is None
        assert jnp.allclose(V0, Vr, atol=7e-2, rtol=5e-2), "V (no-attn) mismatch"

    # small shape (S padded 16 -> 128: exercises padded-key masking) + f32 check
    check(B=2, L=16, H=2, E=32, mask_flag=True, seed=0, test_f32=True)
    # unmasked variant
    check(B=2, L=16, H=2, E=32, mask_flag=False, seed=1)
    # multi-tile query axis (L = S = 256), also exercises bf16 attention maps
    check(B=1, L=256, H=2, E=32, mask_flag=True, seed=2, test_bf16_attn=True)

    print("KERNEL_OK")
</pallas_src>

<mosaic_0001>
module attributes {stable_mosaic.version = 11 : i64} {
  func.func @_anomaly_attn_kernel(%arg0: i32, %arg1: i32, %arg2: memref<1x16x64xf32, #tpu.memory_space<vmem>>, %arg3: memref<1x128x64xf32, #tpu.memory_space<vmem>>, %arg4: memref<1x128x64xf32, #tpu.memory_space<vmem>>, %arg5: memref<1x16x2xf32, #tpu.memory_space<vmem>>, %arg6: memref<1x16x64xf32, #tpu.memory_space<vmem>>, %arg7: memref<1x2x16x128xf32, #tpu.memory_space<vmem>>, %arg8: memref<1x2x16x128xf32, #tpu.memory_space<vmem>>, %arg9: memref<1x2x16x1xf32, #tpu.memory_space<vmem>>) attributes {dimension_semantics = [#tpu.dimension_semantics<parallel>, #tpu.dimension_semantics<parallel>], iteration_bounds = array<i64: 2, 1>, scalar_prefetch = 0 : i64, scratch_operands = 0 : i64, tpu.core_type = #tpu.core_type<tc>, window_params = [{transform_indices = @transform_0, window_bounds = array<i64: 1, 16, 64>}, {transform_indices = @transform_1, window_bounds = array<i64: 1, 128, 64>}, {transform_indices = @transform_2, window_bounds = array<i64: 1, 128, 64>}, {transform_indices = @transform_3, window_bounds = array<i64: 1, 16, 2>}, {transform_indices = @transform_4, window_bounds = array<i64: 1, 16, 64>}, {transform_indices = @transform_5, window_bounds = array<i64: 1, 2, 16, 128>}, {transform_indices = @transform_6, window_bounds = array<i64: 1, 2, 16, 128>}, {transform_indices = @transform_7, window_bounds = array<i64: 1, 2, 16, 1>}]} {
    %c16_i32 = arith.constant 16 : i32
    %0 = arith.muli %arg1, %c16_i32 : i32
    %1 = tpu.iota {dimensions = array<i32: 0>} : vector<16x1xi32>
    %2 = vector.broadcast %0 : i32 to vector<16x1xi32>
    %3 = arith.addi %2, %1 : vector<16x1xi32>
    %4 = tpu.iota {dimensions = array<i32: 1>} : vector<1x128xi32>
    %c16_i32_0 = arith.constant 16 : i32
    %5 = vector.broadcast %c16_i32_0 : i32 to vector<1x128xi32>
    %6 = arith.cmpi sge, %4, %5 : vector<1x128xi32>
    %7 = vector.broadcast %4 : vector<1x128xi32> to vector<16x128xi32>
    %8 = vector.broadcast %3 : vector<16x1xi32> to vector<16x128xi32>
    %9 = arith.cmpi sgt, %7, %8 : vector<16x128xi32>
    %10 = vector.broadcast %6 : vector<1x128xi1> to vector<16x128xi1>
    %11 = arith.ori %9, %10 : vector<16x128xi1>
    %12 = vector.broadcast %3 : vector<16x1xi32> to vector<16x128xi32>
    %13 = vector.broadcast %4 : vector<1x128xi32> to vector<16x128xi32>
    %14 = arith.subi %12, %13 : vector<16x128xi32>
    %15 = arith.sitofp %14 : vector<16x128xi32> to vector<16x128xf32>
    %16 = arith.mulf %15, %15 : vector<16x128xf32>
    %c0 = arith.constant 0 : index
    %c0_1 = arith.constant 0 : index
    %c0_2 = arith.constant 0 : index
    %17 = vector.load %arg5[%c0, %c0_1, %c0_2] : memref<1x16x2xf32, #tpu.memory_space<vmem>>, vector<1x16x1xf32>
    %18 = vector.shape_cast %17 : vector<1x16x1xf32> to vector<16x1xf32>
    %cst = arith.constant 5.000000e+00 : f32
    %19 = vector.broadcast %cst : f32 to vector<16x1xf32>
    %20 = arith.mulf %18, %19 : vector<16x1xf32>
    %21 = arith.negf %20 : vector<16x1xf32>
    %22 = math.exp %21 : vector<16x1xf32>
    %cst_3 = arith.constant 1.000000e+00 : f32
    %23 = vector.broadcast %cst_3 : f32 to vector<16x1xf32>
    %24 = arith.addf %23, %22 : vector<16x1xf32>
    %25 = arith.divf %23, %24 : vector<16x1xf32>
    %cst_4 = arith.constant 9.99999974E-6 : f32
    %26 = vector.broadcast %cst_4 : f32 to vector<16x1xf32>
    %27 = arith.addf %25, %26 : vector<16x1xf32>
    %cst_5 = arith.constant 1.09861231 : f32
    %28 = vector.broadcast %cst_5 : f32 to vector<16x1xf32>
    %29 = arith.mulf %27, %28 : vector<16x1xf32>
    %30 = math.exp %29 : vector<16x1xf32>
    %cst_6 = arith.constant 1.000000e+00 : f32
    %31 = vector.broadcast %cst_6 : f32 to vector<16x1xf32>
    %32 = arith.subf %30, %31 : vector<16x1xf32>
    %33 = tpu.reciprocal %32 {approx = true} : vector<16x1xf32> -> vector<16x1xf32>
    %34 = arith.mulf %32, %33 : vector<16x1xf32>
    %cst_7 = arith.constant 2.000000e+00 : f32
    %35 = vector.broadcast %cst_7 : f32 to vector<16x1xf32>
    %36 = arith.subf %35, %34 : vector<16x1xf32>
    %37 = arith.mulf %33, %36 : vector<16x1xf32>
    %38 = arith.mulf %32, %37 : vector<16x1xf32>
    %cst_8 = arith.constant 2.000000e+00 : f32
    %39 = vector.broadcast %cst_8 : f32 to vector<16x1xf32>
    %40 = arith.subf %39, %38 : vector<16x1xf32>
    %41 = arith.mulf %37, %40 : vector<16x1xf32>
    %cst_9 = arith.constant 0.398942292 : f32
    %42 = vector.broadcast %cst_9 : f32 to vector<16x1xf32>
    %43 = arith.mulf %41, %42 : vector<16x1xf32>
    %44 = arith.mulf %41, %41 : vector<16x1xf32>
    %cst_10 = arith.constant -5.000000e-01 : f32
    %45 = vector.broadcast %cst_10 : f32 to vector<16x1xf32>
    %46 = arith.mulf %45, %44 : vector<16x1xf32>
    %47 = vector.broadcast %46 : vector<16x1xf32> to vector<16x128xf32>
    %48 = arith.mulf %16, %47 : vector<16x128xf32>
    %49 = math.exp %48 : vector<16x128xf32>
    %50 = vector.broadcast %43 : vector<16x1xf32> to vector<16x128xf32>
    %51 = arith.mulf %50, %49 : vector<16x128xf32>
    %c0_11 = arith.constant 0 : index
    %c0_12 = arith.constant 0 : index
    %c0_13 = arith.constant 0 : index
    %c0_14 = arith.constant 0 : index
    %52 = vector.load %arg8[%c0_11, %c0_12, %c0_13, %c0_14] : memref<1x2x16x128xf32, #tpu.memory_space<vmem>>, vector<1x1x16x128xf32>
    %53 = vector.shape_cast %52 : vector<1x1x16x128xf32> to vector<16x128xf32>
    %54 = vector.shape_cast %51 : vector<16x128xf32> to vector<1x1x16x128xf32>
    tpu.vector_store %arg8[%c0_11, %c0_12, %c0_13, %c0_14], %54 {strides = array<i32>} : memref<1x2x16x128xf32, #tpu.memory_space<vmem>>, vector<1x1x16x128xf32>,
    %c0_15 = arith.constant 0 : index
    %c0_16 = arith.constant 0 : index
    %c0_17 = arith.constant 0 : index
    %c0_18 = arith.constant 0 : index
    %55 = vector.load %arg9[%c0_15, %c0_16, %c0_17, %c0_18] : memref<1x2x16x1xf32, #tpu.memory_space<vmem>>, vector<1x1x16x1xf32>
    %56 = vector.shape_cast %55 : vector<1x1x16x1xf32> to vector<16x1xf32>
    %57 = vector.shape_cast %32 : vector<16x1xf32> to vector<1x1x16x1xf32>
    tpu.vector_store %arg9[%c0_15, %c0_16, %c0_17, %c0_18], %57 {strides = array<i32>} : memref<1x2x16x1xf32, #tpu.memory_space<vmem>>, vector<1x1x16x1xf32>,
    %c0_19 = arith.constant 0 : index
    %c0_20 = arith.constant 0 : index
    %c0_21 = arith.constant 0 : index
    %58 = vector.load %arg2[%c0_19, %c0_20, %c0_21] : memref<1x16x64xf32, #tpu.memory_space<vmem>>, vector<1x16x32xf32>
    %59 = vector.shape_cast %58 : vector<1x16x32xf32> to vector<16x32xf32>
    %cst_22 = arith.constant 0.176776692 : f32
    %60 = vector.broadcast %cst_22 : f32 to vector<16x32xf32>
    %61 = arith.mulf %59, %60 : vector<16x32xf32>
    %c0_23 = arith.constant 0 : index
    %c0_24 = arith.constant 0 : index
    %c0_25 = arith.constant 0 : index
    %62 = vector.load %arg3[%c0_23, %c0_24, %c0_25] : memref<1x128x64xf32, #tpu.memory_space<vmem>>, vector<1x128x32xf32>
    %63 = vector.shape_cast %62 : vector<1x128x32xf32> to vector<128x32xf32>
    %cst_26 = arith.constant dense<0.000000e+00> : vector<16x128xf32>
    %64 = tpu.matmul %61, %63, %cst_26 {dimension_numbers = #tpu.dot_dimension_numbers<[1], [1], [0], [0], [0, 0, 1, 0], [], []>, precision = #tpu.contract_precision<fp32>} : vector<16x32xf32>, vector<128x32xf32>, vector<16x128xf32> -> vector<16x128xf32>
    %cst_27 = arith.constant 0xFF800000 : f32
    %65 = vector.broadcast %cst_27 : f32 to vector<16x128xf32>
    %66 = arith.select %11, %65, %64 : vector<16x128xi1>, vector<16x128xf32>
    %cst_28 = arith.constant dense<0xFF800000> : vector<16xf32>
    %67 = vector.multi_reduction <maximumf>, %66, %cst_28 [1] : vector<16x128xf32> to vector<16xf32>
    %68 = vector.shape_cast %67 : vector<16xf32> to vector<16x1xf32>
    %69 = vector.broadcast %68 : vector<16x1xf32> to vector<16x128xf32>
    %70 = arith.subf %66, %69 : vector<16x128xf32>
    %71 = math.exp %70 : vector<16x128xf32>
    %cst_29 = arith.constant dense<0.000000e+00> : vector<16xf32>
    %72 = vector.multi_reduction <add>, %71, %cst_29 [1] : vector<16x128xf32> to vector<16xf32>
    %73 = vector.shape_cast %72 : vector<16xf32> to vector<16x1xf32>
    %74 = tpu.reciprocal %73 {approx = true} : vector<16x1xf32> -> vector<16x1xf32>
    %75 = arith.mulf %73, %74 : vector<16x1xf32>
    %cst_30 = arith.constant 2.000000e+00 : f32
    %76 = vector.broadcast %cst_30 : f32 to vector<16x1xf32>
    %77 = arith.subf %76, %75 : vector<16x1xf32>
    %78 = arith.mulf %74, %77 : vector<16x1xf32>
    %79 = arith.mulf %73, %78 : vector<16x1xf32>
    %cst_31 = arith.constant 2.000000e+00 : f32
    %80 = vector.broadcast %cst_31 : f32 to vector<16x1xf32>
    %81 = arith.subf %80, %79 : vector<16x1xf32>
    %82 = arith.mulf %78, %81 : vector<16x1xf32>
    %83 = vector.broadcast %82 : vector<16x1xf32> to vector<16x128xf32>
    %84 = arith.mulf %71, %83 : vector<16x128xf32>
    %c0_32 = arith.constant 0 : index
    %c0_33 = arith.constant 0 : index
    %c0_34 = arith.constant 0 : index
    %c0_35 = arith.constant 0 : index
    %85 = vector.load %arg7[%c0_32, %c0_33, %c0_34, %c0_35] : memref<1x2x16x128xf32, #tpu.memory_space<vmem>>, vector<1x1x16x128xf32>
    %86 = vector.shape_cast %85 : vector<1x1x16x128xf32> to vector<16x128xf32>
    %87 = vector.shape_cast %84 : vector<16x128xf32> to vector<1x1x16x128xf32>
    tpu.vector_store %arg7[%c0_32, %c0_33, %c0_34, %c0_35], %87 {strides = array<i32>} : memref<1x2x16x128xf32, #tpu.memory_space<vmem>>, vector<1x1x16x128xf32>,
    %c0_36 = arith.constant 0 : index
    %c0_37 = arith.constant 0 : index
    %c0_38 = arith.constant 0 : index
    %88 = vector.load %arg4[%c0_36, %c0_37, %c0_38] : memref<1x128x64xf32, #tpu.memory_space<vmem>>, vector<1x128x32xf32>
    %89 = vector.shape_cast %88 : vector<1x128x32xf32> to vector<128x32xf32>
    %cst_39 = arith.constant dense<0.000000e+00> : vector<16x32xf32>
    %90 = tpu.matmul %84, %89, %cst_39 {dimension_numbers = #tpu.dot_dimension_numbers<[1], [0], [0], [1], [0, 0, 1, 1], [], []>, precision = #tpu.contract_precision<fp32>} : vector<16x128xf32>, vector<128x32xf32>, vector<16x32xf32> -> vector<16x32xf32>
    %c0_40 = arith.constant 0 : index
    %c0_41 = arith.constant 0 : index
    %c0_42 = arith.constant 0 : index
    %91 = vector.load %arg6[%c0_40, %c0_41, %c0_42] : memref<1x16x64xf32, #tpu.memory_space<vmem>>, vector<1x16x32xf32>
    %92 = vector.shape_cast %91 : vector<1x16x32xf32> to vector<16x32xf32>
    %93 = vector.shape_cast %90 : vector<16x32xf32> to vector<1x16x32xf32>
    tpu.vector_store %arg6[%c0_40, %c0_41, %c0_42], %93 {strides = array<i32>} : memref<1x16x64xf32, #tpu.memory_space<vmem>>, vector<1x16x32xf32>,
    %c0_43 = arith.constant 0 : index
    %c0_44 = arith.constant 0 : index
    %c1 = arith.constant 1 : index
    %94 = vector.load %arg5[%c0_43, %c0_44, %c1] : memref<1x16x2xf32, #tpu.memory_space<vmem>>, vector<1x16x1xf32>
    %95 = vector.shape_cast %94 : vector<1x16x1xf32> to vector<16x1xf32>
    %cst_45 = arith.constant 5.000000e+00 : f32
    %96 = vector.broadcast %cst_45 : f32 to vector<16x1xf32>
    %97 = arith.mulf %95, %96 : vector<16x1xf32>
    %98 = arith.negf %97 : vector<16x1xf32>
    %99 = math.exp %98 : vector<16x1xf32>
    %cst_46 = arith.constant 1.000000e+00 : f32
    %100 = vector.broadcast %cst_46 : f32 to vector<16x1xf32>
    %101 = arith.addf %100, %99 : vector<16x1xf32>
    %102 = arith.divf %100, %101 : vector<16x1xf32>
    %cst_47 = arith.constant 9.99999974E-6 : f32
    %103 = vector.broadcast %cst_47 : f32 to vector<16x1xf32>
    %104 = arith.addf %102, %103 : vector<16x1xf32>
    %cst_48 = arith.constant 1.09861231 : f32
    %105 = vector.broadcast %cst_48 : f32 to vector<16x1xf32>
    %106 = arith.mulf %104, %105 : vector<16x1xf32>
    %107 = math.exp %106 : vector<16x1xf32>
    %cst_49 = arith.constant 1.000000e+00 : f32
    %108 = vector.broadcast %cst_49 : f32 to vector<16x1xf32>
    %109 = arith.subf %107, %108 : vector<16x1xf32>
    %110 = tpu.reciprocal %109 {approx = true} : vector<16x1xf32> -> vector<16x1xf32>
    %111 = arith.mulf %109, %110 : vector<16x1xf32>
    %cst_50 = arith.constant 2.000000e+00 : f32
    %112 = vector.broadcast %cst_50 : f32 to vector<16x1xf32>
    %113 = arith.subf %112, %111 : vector<16x1xf32>
    %114 = arith.mulf %110, %113 : vector<16x1xf32>
    %115 = arith.mulf %109, %114 : vector<16x1xf32>
    %cst_51 = arith.constant 2.000000e+00 : f32
    %116 = vector.broadcast %cst_51 : f32 to vector<16x1xf32>
    %117 = arith.subf %116, %115 : vector<16x1xf32>
    %118 = arith.mulf %114, %117 : vector<16x1xf32>
    %cst_52 = arith.constant 0.398942292 : f32
    %119 = vector.broadcast %cst_52 : f32 to vector<16x1xf32>
    %120 = arith.mulf %118, %119 : vector<16x1xf32>
    %121 = arith.mulf %118, %118 : vector<16x1xf32>
    %cst_53 = arith.constant -5.000000e-01 : f32
    %122 = vector.broadcast %cst_53 : f32 to vector<16x1xf32>
    %123 = arith.mulf %122, %121 : vector<16x1xf32>
    %124 = vector.broadcast %123 : vector<16x1xf32> to vector<16x128xf32>
    %125 = arith.mulf %16, %124 : vector<16x128xf32>
    %126 = math.exp %125 : vector<16x128xf32>
    %127 = vector.broadcast %120 : vector<16x1xf32> to vector<16x128xf32>
    %128 = arith.mulf %127, %126 : vector<16x128xf32>
    %c0_54 = arith.constant 0 : index
    %c1_55 = arith.constant 1 : index
    %c0_56 = arith.constant 0 : index
    %c0_57 = arith.constant 0 : index
    %129 = vector.load %arg8[%c0_54, %c1_55, %c0_56, %c0_57] : memref<1x2x16x128xf32, #tpu.memory_space<vmem>>, vector<1x1x16x128xf32>
    %130 = vector.shape_cast %129 : vector<1x1x16x128xf32> to vector<16x128xf32>
    %131 = vector.shape_cast %128 : vector<16x128xf32> to vector<1x1x16x128xf32>
    tpu.vector_store %arg8[%c0_54, %c1_55, %c0_56, %c0_57], %131 {strides = array<i32>} : memref<1x2x16x128xf32, #tpu.memory_space<vmem>>, vector<1x1x16x128xf32>,
    %c0_58 = arith.constant 0 : index
    %c1_59 = arith.constant 1 : index
    %c0_60 = arith.constant 0 : index
    %c0_61 = arith.constant 0 : index
    %132 = vector.load %arg9[%c0_58, %c1_59, %c0_60, %c0_61] : memref<1x2x16x1xf32, #tpu.memory_space<vmem>>, vector<1x1x16x1xf32>
    %133 = vector.shape_cast %132 : vector<1x1x16x1xf32> to vector<16x1xf32>
    %134 = vector.shape_cast %109 : vector<16x1xf32> to vector<1x1x16x1xf32>
    tpu.vector_store %arg9[%c0_58, %c1_59, %c0_60, %c0_61], %134 {strides = array<i32>} : memref<1x2x16x1xf32, #tpu.memory_space<vmem>>, vector<1x1x16x1xf32>,
    %c0_62 = arith.constant 0 : index
    %c0_63 = arith.constant 0 : index
    %c32 = arith.constant 32 : index
    %135 = vector.load %arg2[%c0_62, %c0_63, %c32] : memref<1x16x64xf32, #tpu.memory_space<vmem>>, vector<1x16x32xf32>
    %136 = vector.shape_cast %135 : vector<1x16x32xf32> to vector<16x32xf32>
    %cst_64 = arith.constant 0.176776692 : f32
    %137 = vector.broadcast %cst_64 : f32 to vector<16x32xf32>
    %138 = arith.mulf %136, %137 : vector<16x32xf32>
    %c0_65 = arith.constant 0 : index
    %c0_66 = arith.constant 0 : index
    %c32_67 = arith.constant 32 : index
    %139 = vector.load %arg3[%c0_65, %c0_66, %c32_67] : memref<1x128x64xf32, #tpu.memory_space<vmem>>, vector<1x128x32xf32>
    %140 = vector.shape_cast %139 : vector<1x128x32xf32> to vector<128x32xf32>
    %cst_68 = arith.constant dense<0.000000e+00> : vector<16x128xf32>
    %141 = tpu.matmul %138, %140, %cst_68 {dimension_numbers = #tpu.dot_dimension_numbers<[1], [1], [0], [0], [0, 0, 1, 0], [], []>, precision = #tpu.contract_precision<fp32>} : vector<16x32xf32>, vector<128x32xf32>, vector<16x128xf32> -> vector<16x128xf32>
    %cst_69 = arith.constant 0xFF800000 : f32
    %142 = vector.broadcast %cst_69 : f32 to vector<16x128xf32>
    %143 = arith.select %11, %142, %141 : vector<16x128xi1>, vector<16x128xf32>
    %cst_70 = arith.constant dense<0xFF800000> : vector<16xf32>
    %144 = vector.multi_reduction <maximumf>, %143, %cst_70 [1] : vector<16x128xf32> to vector<16xf32>
    %145 = vector.shape_cast %144 : vector<16xf32> to vector<16x1xf32>
    %146 = vector.broadcast %145 : vector<16x1xf32> to vector<16x128xf32>
    %147 = arith.subf %143, %146 : vector<16x128xf32>
    %148 = math.exp %147 : vector<16x128xf32>
    %cst_71 = arith.constant dense<0.000000e+00> : vector<16xf32>
    %149 = vector.multi_reduction <add>, %148, %cst_71 [1] : vector<16x128xf32> to vector<16xf32>
    %150 = vector.shape_cast %149 : vector<16xf32> to vector<16x1xf32>
    %151 = tpu.reciprocal %150 {approx = true} : vector<16x1xf32> -> vector<16x1xf32>
    %152 = arith.mulf %150, %151 : vector<16x1xf32>
    %cst_72 = arith.constant 2.000000e+00 : f32
    %153 = vector.broadcast %cst_72 : f32 to vector<16x1xf32>
    %154 = arith.subf %153, %152 : vector<16x1xf32>
    %155 = arith.mulf %151, %154 : vector<16x1xf32>
    %156 = arith.mulf %150, %155 : vector<16x1xf32>
    %cst_73 = arith.constant 2.000000e+00 : f32
    %157 = vector.broadcast %cst_73 : f32 to vector<16x1xf32>
    %158 = arith.subf %157, %156 : vector<16x1xf32>
    %159 = arith.mulf %155, %158 : vector<16x1xf32>
    %160 = vector.broadcast %159 : vector<16x1xf32> to vector<16x128xf32>
    %161 = arith.mulf %148, %160 : vector<16x128xf32>
    %c0_74 = arith.constant 0 : index
    %c1_75 = arith.constant 1 : index
    %c0_76 = arith.constant 0 : index
    %c0_77 = arith.constant 0 : index
    %162 = vector.load %arg7[%c0_74, %c1_75, %c0_76, %c0_77] : memref<1x2x16x128xf32, #tpu.memory_space<vmem>>, vector<1x1x16x128xf32>
    %163 = vector.shape_cast %162 : vector<1x1x16x128xf32> to vector<16x128xf32>
    %164 = vector.shape_cast %161 : vector<16x128xf32> to vector<1x1x16x128xf32>
    tpu.vector_store %arg7[%c0_74, %c1_75, %c0_76, %c0_77], %164 {strides = array<i32>} : memref<1x2x16x128xf32, #tpu.memory_space<vmem>>, vector<1x1x16x128xf32>,
    %c0_78 = arith.constant 0 : index
    %c0_79 = arith.constant 0 : index
    %c32_80 = arith.constant 32 : index
    %165 = vector.load %arg4[%c0_78, %c0_79, %c32_80] : memref<1x128x64xf32, #tpu.memory_space<vmem>>, vector<1x128x32xf32>
    %166 = vector.shape_cast %165 : vector<1x128x32xf32> to vector<128x32xf32>
    %cst_81 = arith.constant dense<0.000000e+00> : vector<16x32xf32>
    %167 = tpu.matmul %161, %166, %cst_81 {dimension_numbers = #tpu.dot_dimension_numbers<[1], [0], [0], [1], [0, 0, 1, 1], [], []>, precision = #tpu.contract_precision<fp32>} : vector<16x128xf32>, vector<128x32xf32>, vector<16x32xf32> -> vector<16x32xf32>
    %c0_82 = arith.constant 0 : index
    %c0_83 = arith.constant 0 : index
    %c32_84 = arith.constant 32 : index
    %168 = vector.load %arg6[%c0_82, %c0_83, %c32_84] : memref<1x16x64xf32, #tpu.memory_space<vmem>>, vector<1x16x32xf32>
    %169 = vector.shape_cast %168 : vector<1x16x32xf32> to vector<16x32xf32>
    %170 = vector.shape_cast %167 : vector<16x32xf32> to vector<1x16x32xf32>
    tpu.vector_store %arg6[%c0_82, %c0_83, %c32_84], %170 {strides = array<i32>} : memref<1x16x64xf32, #tpu.memory_space<vmem>>, vector<1x16x32xf32>,
    return
  }
  func.func @transform_0(%arg0: i32, %arg1: i32) -> (i32, i32, i32) {
    %c0_i32 = arith.constant 0 : i32
    %c0_i32_0 = arith.constant 0 : i32
    return %arg0, %arg1, %c0_i32 : i32, i32, i32
  }
  func.func @transform_1(%arg0: i32, %arg1: i32) -> (i32, i32, i32) {
    %c0_i32 = arith.constant 0 : i32
    %c0_i32_0 = arith.constant 0 : i32
    %c0_i32_1 = arith.constant 0 : i32
    return %arg0, %c0_i32, %c0_i32_0 : i32, i32, i32
  }
  func.func @transform_2(%arg0: i32, %arg1: i32) -> (i32, i32, i32) {
    %c0_i32 = arith.constant 0 : i32
    %c0_i32_0 = arith.constant 0 : i32
    %c0_i32_1 = arith.constant 0 : i32
    return %arg0, %c0_i32, %c0_i32_0 : i32, i32, i32
  }
  func.func @transform_3(%arg0: i32, %arg1: i32) -> (i32, i32, i32) {
    %c0_i32 = arith.constant 0 : i32
    %c0_i32_0 = arith.constant 0 : i32
    return %arg0, %arg1, %c0_i32 : i32, i32, i32
  }
  func.func @transform_4(%arg0: i32, %arg1: i32) -> (i32, i32, i32) {
    %c0_i32 = arith.constant 0 : i32
    %c0_i32_0 = arith.constant 0 : i32
    return %arg0, %arg1, %c0_i32 : i32, i32, i32
  }
  func.func @transform_5(%arg0: i32, %arg1: i32) -> (i32, i32, i32, i32) {
    %c0_i32 = arith.constant 0 : i32
    %c0_i32_0 = arith.constant 0 : i32
    %c0_i32_1 = arith.constant 0 : i32
    return %arg0, %c0_i32, %arg1, %c0_i32_0 : i32, i32, i32, i32
  }
  func.func @transform_6(%arg0: i32, %arg1: i32) -> (i32, i32, i32, i32) {
    %c0_i32 = arith.constant 0 : i32
    %c0_i32_0 = arith.constant 0 : i32
    %c0_i32_1 = arith.constant 0 : i32
    return %arg0, %c0_i32, %arg1, %c0_i32_0 : i32, i32, i32, i32
  }
  func.func @transform_7(%arg0: i32, %arg1: i32) -> (i32, i32, i32, i32) {
    %c0_i32 = arith.constant 0 : i32
    %c0_i32_0 = arith.constant 0 : i32
    %c0_i32_1 = arith.constant 0 : i32
    return %arg0, %c0_i32, %arg1, %c0_i32_0 : i32, i32, i32, i32
  }
}

</mosaic_0001>

<bundles_post_ra>
// kernel: tpu_custom_call.1
= control target key start
LH: loop header
LB: loop body
LE: loop exit
PB: predicated region body
PF: predicated region fallthrough
CT: control target
= control target key end

     0   :  { %s4512_s0 = inlined_call_operand.vmem [shape: f32[2,16,64], index: 0, kind: input, shape index: {}]   ;;  %s4513_s1 = inlined_call_operand.vmem [shape: f32[2,128,64], index: 1, kind: input, shape index: {}]   ;;  %s4514_s2 = inlined_call_operand.vmem [shape: f32[2,128,64], index: 2, kind: input, shape index: {}]   ;;  %s4515_s3 = inlined_call_operand.vmem [shape: f32[2,16,2], index: 3, kind: input, shape index: {}]   ;;  %s4516_s4 = inlined_call_operand.hbm [shape: f32[2,16,64], index: 4, kind: output, shape index: {0}]   ;;  %s4517_s5 = inlined_call_operand.hbm [shape: f32[2,2,16,128], index: 5, kind: output, shape index: {1}]   ;;  %s4518_s6 = inlined_call_operand.hbm [shape: f32[2,2,16,128], index: 6, kind: output, shape index: {2}]   ;;  %s4519_s7 = inlined_call_operand.vmem [shape: f32[2,2,16,1], index: 7, kind: output, shape index: {3}]  }
   0x1   :  { %4536 = sst [smem:[#allocation9_spill]] %s4512_s0 }
   0x2   :  { %4537 = sst [smem:[#allocation10_spill]] %s4513_s1 }
   0x3   :  { %4538 = sst [smem:[#allocation11_spill]] %s4514_s2 }
   0x4   :  { %13 = vsyncpa [#allocation3], 0 }
   0x5   :  { %15 = vsyncpa [#allocation3 + $0x1], 0 }
   0x6   :  { %16 = vsyncpa [#allocation5], 0 }
   0x7   :  { %18 = vsyncpa [#allocation5 + $0x1], 0  ;;  %s3190_s24 = smov 0   ;;  %s3192_s25 = smov 0  }
   0x8   :  { %s3194_s26 = smov 0   ;;  %s3196_s27 = smov 0  }
   0x9   :  { %s3198_s28 = smov 0   ;;  %s3200_s29 = smov 0  }
   0xa LB: > { %s2829_s30 = sadd.s32 4294967295, %s3141_s29   ;;  %s4530_s8 = sadd.s32 4294967294, %s3141_s29   ;;  %s3141_s29 = sphi %s3200_s29, %s24_s29   ;;  %s3137_s28 = sphi %s3198_s28, %s4569_s28   ;;  %s3133_s27 = sphi %s3196_s27, %s4568_s27   ;;  %s3129_s26 = sphi %s3194_s26, %s4567_s26   ;;  %s3125_s25 = sphi %s3192_s25, %s4566_s25   ;;  %s3121_s24 = sphi %s3190_s24, %s4565_s24  }
   0xb   : > { %s36_s9 = sadd.s32 1, %s3137_s28  ;;  %s153_s10 = sadd.s32 1, %s3129_s26 }
   0xc   : > { %p38_p0 = scmp.ge.s32.totalorder %s36_s9, 2  ;;  %p163_p1 = scmp.ne.s32.totalorder %s3129_s26, %s3125_s25 }
   0xd   : > { %p164_p2 = scmp.eq.s32.totalorder %s2829_s30, 1  ;;  %p169_p3 = scmp.ne.s32.totalorder %s3125_s25, %s3121_s24 }
   0xe   : > { %s4571_s9 = smov (%p38_p0, %s36_s9), 0  ;;  %p170_p5 = scmp.eq.s32.totalorder %s4530_s8, 1 }
   0xf   : > { %p3232_p4 = por %p164_p2, %p163_p1  ;;  %s148_s12 = ssub.s32 %s3137_s28, %s4571_s9 }
  0x10   : > { %p2833_p6 = scmp.ge.s32.totalorder %s3141_s29, 1  ;;  %p151_p7 = scmp.eq.s32.totalorder %s148_s12, 0 }
  0x11   : > { %p3241_p8 = por %p170_p5, %p169_p3  ;;  %p314_p9 = scmp.lt.s32.totalorder %s3141_s29, 3 }
  0x12   : > { %s3247_s14 = scalar_select %p151_p7, %s3129_s26, %s153_s10  }
  0x13   : > { %p315_p10 = pnand %p2833_p6, %p314_p9 }
  0x14   : > { %p389_p11 = scmp.lt.s32.totalorder (!%p315_p10), %s3133_s27, 1  ;;  %s4541_s1 = sld [smem:[#allocation10_spill]] (!%p315_p10) }
  0x15   : > { %318 = sbr.rel (%p315_p10) target bundleno = 1406 (0x57e), region = 36  ;;  %s4542_s0 = sld [smem:[#allocation9_spill]] (!%p315_p10) }
  0x16   : > { %s3143_s10 = smov (!%p315_p10), 96   ;;  %s4555_s2 = sld [smem:[#allocation11_spill]] (!%p315_p10) }
  0x17   : > { %s4413_s8 = sand.u32 (!%p315_p10), 1, %s2829_s30   ;;  %s3023_s12 = scalar_lea.hbm (!%p315_p10), %s4517_s5, 64 }
  0x1a   : > { %s3251_s15 = scalar_select %p389_p11, %s3133_s27, 1  ;;  %vm578_vm0 = vcmask 261120  }
  0x1c   : > { %s2873_s16 = sshll.u32 %s3251_s15, 7  ;;  %s2872_s20 = sshll.u32 %s3251_s15, 4 }
  0x1d   : > { %s3259_s19 = scalar_lea.vmem %s4541_s1, %s2873_s16  ;;  %s396_s23 = scalar_lea.vmem %s4542_s0, %s2872_s20 }
  0x1e   : > { %v3262_v0 = vld [vmem:[%s3259_s19 + $0x78] sm:$0xff]  ;;  %v3265_v1 = vld [vmem:[%s3259_s19 + $0x70] sm:$0xff]  ;;  %v3268_v2 = vld [vmem:[%s3259_s19 + $0x68] sm:$0xff]  ;;  %s3662_s18 = scalar_lea.vmem %s4555_s2, %s2873_s16  ;;  %s3905_s16 = sand.u32 1, %s3125_s25  }
  0x1f   : > { %v631_v3 = vsel %vm578_vm0, %v3262_v0, 0  ;;  %v628_v4 = vsel %vm578_vm0, %v3265_v1, 0  ;;  %v625_v5 = vsel %vm578_vm0, %v3268_v2, 0  ;;  %v3277_v6 = vld [vmem:[%s3259_s19 + $0x60] sm:$0xff]  ;;  %v3280_v7 = vld [vmem:[%s3259_s19 + $0x58] sm:$0xff]  ;;  %v3305_v17 = vld [vmem:[%s3259_s19 + $0x50] sm:$0xff]  ;;  %1615 = vrot.lane.b32.xlu2 %v3262_v0, %s3143_s10  ;;  %s416_s17 = scalar_lea.vmem %s4515_s3, %s2872_s20 }
  0x20   : > { %v3282_v8 = vand.u32 4294901760, %v631_v3  ;;  %v3284_v9 = vand.u32 4294901760, %v628_v4  ;;  %v3286_v10 = vand.u32 4294901760, %v625_v5  ;;  %v622_v11 = vsel %vm578_vm0, %v3277_v6, 0  ;;  %v3327_v26 = vld [vmem:[%s3259_s19 + $0x48] sm:$0xff]  ;;  %v3344_v34 = vld [vmem:[%s3259_s19 + $0x40] sm:$0xff] }
  0x21   : > { %v3290_v12 = vand.u32 4294901760, %v622_v11  ;;  %v619_v15 = vsel %vm578_vm0, %v3280_v7, 0  ;;  %v616_v21 = vsel %vm578_vm0, %v3305_v17, 0  ;;  %v613_v29 = vsel %vm578_vm0, %v3327_v26, 0  ;;  %v3361_v41 = vld [vmem:[%s3259_s19 + $0x38] sm:$0xff]  ;;  %v3378_v48 = vld [vmem:[%s3259_s19 + $0x30] sm:$0xff] }
  0x22   : > { %634 = vmatpush.xpose.msra.mxu0 %v3282_v8  ;;  %v3294_v13 = vsub.f32 %v631_v3, %v3282_v8  ;;  %v3297_v14 = vsub.f32 %v628_v4, %v3284_v9  ;;  %v3302_v16 = vsub.f32 %v625_v5, %v3286_v10  ;;  %847 = vmatpush.xpose.msra.mxu3 %v3282_v8  ;;  %v3311_v20 = vand.u32 4294901760, %v619_v15  ;;  %v3395_v55 = vld [vmem:[%s3259_s19 + $0x28] sm:$0xff]  ;;  %v3412_v62 = vld [vmem:[%s3259_s19 + $0x20] sm:$0xff]  ;;  %s2834_s22 = sshll.u32 %s3905_s16, 4  ;;  %s4532_s20 = smov 127  }
  0x23   : > { %v3324_v25 = vsub.f32 %v622_v11, %v3290_v12  ;;  %v3331_v28 = vand.u32 4294901760, %v616_v21  ;;  %v3348_v35 = vand.u32 4294901760, %v613_v29  ;;  %v610_v40 = vsel %vm578_vm0, %v3344_v34, 0 }
  0x24   : > { %v684_v18 = vand.u32 4294901760, %v3294_v13  ;;  %v690_v19 = vand.u32 4294901760, %v3297_v14  ;;  %789 = vmatpush.xpose.msra.mxu2 %v3294_v13  ;;  %v696_v24 = vand.u32 4294901760, %v3302_v16  ;;  %v3341_v33 = vsub.f32 %v619_v15, %v3311_v20 }
  0x25   : > { %v702_v32 = vand.u32 4294901760, %v3324_v25  ;;  %v3351_v36 = vsub.f32 %v616_v21, %v3331_v28  ;;  %v3365_v42 = vand.u32 4294901760, %v610_v40  ;;  %v607_v46 = vsel %vm578_vm0, %v3361_v41, 0  ;;  %v3430_v21 = vld [vmem:[%s3259_s19 + $0x18] sm:$0xff] }
  0x26   : > { %636 = vmatpush.xpose.msra.mxu0 %v3284_v9  ;;  %v685_v22 = vsub.f32 %v3294_v13, %v684_v18  ;;  %v691_v23 = vsub.f32 %v3297_v14, %v690_v19  ;;  %849 = vmatpush.xpose.msra.mxu3 %v3284_v9  ;;  %v697_v31 = vsub.f32 %v3302_v16, %v696_v24  ;;  %v708_v39 = vand.u32 4294901760, %v3341_v33 }
  0x27   : > { %v703_v38 = vsub.f32 %v3324_v25, %v702_v32  ;;  %v714_v43 = vand.u32 4294901760, %v3351_v36  ;;  %v3375_v47 = vsub.f32 %v613_v29, %v3348_v35  ;;  %v3385_v50 = vand.u32 4294901760, %v607_v46  ;;  %1613 = vrot.lane.b32.xlu2 %v3265_v1, %s3143_s10 }
  0x28   : > { %v686_v27 = vand.u32 4294901760, %v685_v22  ;;  %792 = vmatpush.xpose.msra.mxu2 %v3297_v14  ;;  %v692_v30 = vand.u32 4294901760, %v691_v23  ;;  %v698_v37 = vand.u32 4294901760, %v697_v31  ;;  %v709_v45 = vsub.f32 %v3341_v33, %v708_v39 }
  0x29   : > { %v704_v44 = vand.u32 4294901760, %v703_v38  ;;  %v715_v49 = vsub.f32 %v3351_v36, %v714_v43  ;;  %v720_v52 = vand.u32 4294901760, %v3375_v47  ;;  %v604_v53 = vsel %vm578_vm0, %v3378_v48, 0 }
  0x2a   : > { %638 = vmatpush.xpose.msra.mxu0 %v3286_v10  ;;  %687 = vmatpush.xpose.msra.mxu1 %v686_v27  ;;  %v710_v51 = vand.u32 4294901760, %v709_v45  ;;  %v3392_v54 = vsub.f32 %v610_v40, %v3365_v42  ;;  %v3399_v56 = vand.u32 4294901760, %v604_v53  ;;  %v601_v57 = vsel %vm578_vm0, %v3395_v55, 0 }
  0x2b   : > { %851 = vmatpush.xpose.msra.mxu3 %v3286_v10  ;;  %v716_v58 = vand.u32 4294901760, %v715_v49  ;;  %v721_v59 = vsub.f32 %v3375_v47, %v720_v52  ;;  %v3409_v61 = vsub.f32 %v607_v46, %v3385_v50  ;;  %v3416_v63 = vand.u32 4294901760, %v601_v57 }
  0x2c   : > { %795 = vmatpush.xpose.msra.mxu2 %v3302_v16  ;;  %v726_v60 = vand.u32 4294901760, %v3392_v54  ;;  %v598_v3 = vsel %vm578_vm0, %v3412_v62, 0  ;;  %v3426_v15 = vsub.f32 %v604_v53, %v3399_v56  ;;  %v595_v31 = vsel %vm578_vm0, %v3430_v21, 0 }
  0x2d   : > { %v722_v4 = vand.u32 4294901760, %v721_v59  ;;  %v4524_v11 = vand.u32 4294901760, %v3409_v61  ;;  %v3433_v22 = vand.u32 4294901760, %v598_v3  ;;  %v3457_v45 = vand.u32 4294901760, %v595_v31 }
  0x2e   : > { %640 = vmatpush.xpose.msra.mxu0 %v3290_v12  ;;  %693 = vmatpush.xpose.msra.mxu1 %v692_v30  ;;  %v727_v5 = vsub.f32 %v3392_v54, %v726_v60  ;;  %v4521_v29 = vand.u32 4294901760, %v3426_v15  ;;  %v3441_v30 = vsub.f32 %v601_v57, %v3416_v63 }
  0x2f   : > { %853 = vmatpush.xpose.msra.mxu3 %v3290_v12  ;;  %v733_v27 = vsub.f32 %v3409_v61, %v4524_v11  ;;  %v3451_v38 = vsub.f32 %v598_v3, %v3433_v22  ;;  %v3475_v3 = vsub.f32 %v595_v31, %v3457_v45  ;;  %1607 = vrot.lane.b32.xlu2 %v3280_v7, %s3143_s10 }
  0x30   : > { %798 = vmatpush.xpose.msra.mxu2 %v3324_v25  ;;  %v728_v23 = vand.u32 4294901760, %v727_v5  ;;  %v4520_v46 = vand.u32 4294901760, %v3441_v30  ;;  %v3481_v5 = vld [vmem:[%s3259_s19] sm:$0xff]  ;;  %v4544_v25 = vand.u32 4294901760, %v3426_v15 }
  0x31   : > { %v734_v40 = vand.u32 4294901760, %v733_v27  ;;  %v4522_v53 = vand.u32 4294901760, %v3451_v38  ;;  %v4523_v31 = vand.u32 4294901760, %v3475_v3 }
  0x32   : > { %642 = vmatpush.xpose.msra.mxu0 %v3311_v20  ;;  %699 = vmatpush.xpose.msra.mxu1 %v698_v37  ;;  %v3447_v37 = vld [vmem:[%s3259_s19 + $0x10] sm:$0xff] }
  0x33   : > { %855 = vmatpush.xpose.msra.mxu3 %v3311_v20  ;;  %v592_v49 = vsel %vm578_vm0, %v3447_v37, 0 }
  0x34   : > { %801 = vmatpush.xpose.msra.mxu2 %v3341_v33  ;;  %v3472_v59 = vand.u32 4294901760, %v592_v49 }
  0x36   : > { %644 = vmatpush.xpose.msra.mxu0 %v3331_v28  ;;  %705 = vmatpush.xpose.msra.mxu1 %v704_v44  ;;  %v739_v44 = vsub.f32 %v3426_v15, %v4521_v29 }
  0x37   : > { %857 = vmatpush.xpose.msra.mxu3 %v3331_v28  ;;  %1605 = vrot.lane.b32.xlu2 %v3305_v17, %s3143_s10 }
  0x38   : > { %804 = vmatpush.xpose.msra.mxu2 %v3351_v36  ;;  %v740_v57 = vand.u32 4294901760, %v739_v44  ;;  %v3492_v44 = vsub.f32 %v592_v49, %v3472_v59 }
  0x3a   : > { %646 = vmatpush.xpose.msra.mxu0 %v3348_v35  ;;  %711 = vmatpush.xpose.msra.mxu1 %v710_v51  ;;  %v3464_v51 = vld [vmem:[%s3259_s19 + $0x8] sm:$0xff]  ;;  %v4526_v49 = vand.u32 4294901760, %v3492_v44  ;;  %s4531_s19 = sshll.u32 %s3905_s16, 5 }
  0x3b   : > { %859 = vmatpush.xpose.msra.mxu3 %v3348_v35  ;;  %s3920_s21 = scalar_lea.vmem [#allocation4], %s4531_s19 }
  0x3c   : > { %807 = vmatpush.xpose.msra.mxu2 %v3375_v47 }
  0x3e   : > { %648 = vmatpush.xpose.msra.mxu0 %v3365_v42  ;;  %717 = vmatpush.xpose.msra.mxu1 %v716_v58  ;;  %v745_v58 = vsub.f32 %v3441_v30, %v4520_v46  ;;  %v586_v46 = vsel %vm578_vm0, %v3481_v5, 0 }
  0x3f   : > { %861 = vmatpush.xpose.msra.mxu3 %v3365_v42  ;;  %1603 = vrot.lane.b32.xlu2 %v3327_v26, %s3143_s10 }
  0x40   : > { %810 = vmatpush.xpose.msra.mxu2 %v3392_v54  ;;  %v746_v27 = vand.u32 4294901760, %v745_v58  ;;  %v3502_v58 = vand.u32 4294901760, %v586_v46 }
  0x42   : > { %650 = vmatpush.xpose.msra.mxu0 %v3385_v50  ;;  %723 = vmatpush.xpose.msra.mxu1 %v722_v4  ;;  %v589_v4 = vsel %vm578_vm0, %v3464_v51, 0  ;;  %v3516_v11 = vsub.f32 %v586_v46, %v3502_v58 }
  0x43   : > { %863 = vmatpush.xpose.msra.mxu3 %v3385_v50 }
  0x44   : > { %813 = vmatpush.xpose.msra.mxu2 %v3409_v61 }
  0x46   : > { %652 = vmatpush.xpose.msra.mxu0 %v3399_v56  ;;  %729 = vmatpush.xpose.msra.mxu1 %v728_v23  ;;  %v751_v23 = vsub.f32 %v3451_v38, %v4522_v53 }
  0x47   : > { %865 = vmatpush.xpose.msra.mxu3 %v3399_v56  ;;  %1599 = vrot.lane.b32.xlu2 %v3361_v41, %s3143_s10 }
  0x48   : > { %816 = vmatpush.xpose.msra.mxu2 %v3426_v15  ;;  %v752_v29 = vand.u32 4294901760, %v751_v23 }
  0x4a   : > { %654 = vmatpush.xpose.msra.mxu0 %v3416_v63  ;;  %735 = vmatpush.xpose.msra.mxu1 %v734_v40  ;;  %v3488_v40 = vand.u32 4294901760, %v589_v4 }
  0x4b   : > { %867 = vmatpush.xpose.msra.mxu3 %v3416_v63 }
  0x4c   : > { %819 = vmatpush.xpose.msra.mxu2 %v3441_v30  ;;  %v3506_v53 = vsub.f32 %v589_v4, %v3488_v40 }
  0x4e   : > { %656 = vmatpush.xpose.msra.mxu0 %v3433_v22  ;;  %741 = vmatpush.xpose.msra.mxu1 %v740_v57  ;;  %v757_v57 = vsub.f32 %v3475_v3, %v4523_v31  ;;  %v4525_v31 = vand.u32 4294901760, %v3506_v53  ;;  %v4549_v33 = vand.u32 4294901760, %v3506_v53 }
  0x4f   : > { %869 = vmatpush.xpose.msra.mxu3 %v3433_v22  ;;  %1593 = vrot.lane.b32.xlu2 %v3412_v62, %s3143_s10  ;;  %v1053_v62 = vld [vmem:[%s3662_s18 + $0x70] sm:$0xff] }
  0x50   : > { %822 = vmatpush.xpose.msra.mxu2 %v3451_v38  ;;  %v758_v23 = vand.u32 4294901760, %v757_v57  ;;  %v4527_v57 = vand.u32 4294901760, %v3516_v11 }
  0x52   : > { %658 = vmatpush.xpose.msra.mxu0 %v3457_v45  ;;  %747 = vmatpush.xpose.msra.mxu1 %v746_v27  ;;  %v763_v27 = vsub.f32 %v3492_v44, %v4526_v49 }
  0x53   : > { %871 = vmatpush.xpose.msra.mxu3 %v3457_v45 }
  0x54   : > { %825 = vmatpush.xpose.msra.mxu2 %v3475_v3  ;;  %v764_v4 = vand.u32 4294901760, %v763_v27  ;;  %v558_v27 = vld [vmem:[%s396_s23] sm:$0xff] }
  0x56   : > { %660 = vmatpush.xpose.msra.mxu0 %v3472_v59  ;;  %753 = vmatpush.xpose.msra.mxu1 %v752_v29  ;;  %v769_v29 = vsub.f32 %v3506_v53, %v4525_v31  ;;  %v3541_v31 = vmul.f32 0.17677669, %v558_v27 }
  0x57   : > { %873 = vmatpush.xpose.msra.mxu3 %v3472_v59  ;;  %1587 = vrot.lane.b32.xlu2 %v3464_v51, %s3143_s10  ;;  %v3668_v51 = vand.u32 4294901760, %v1053_v62 }
  0x58   : > { %828 = vmatpush.xpose.msra.mxu2 %v3492_v44  ;;  %v770_v46 = vand.u32 4294901760, %v769_v29 }
  0x5a   : > { %662 = vmatpush.xpose.msra.mxu0 %v3488_v40  ;;  %759 = vmatpush.xpose.msra.mxu1 %v758_v23  ;;  %v775_v23 = vsub.f32 %v3516_v11, %v4527_v57 }
  0x5b   : > { %875 = vmatpush.xpose.msra.mxu3 %v3488_v40 }
  0x5c   : > { %831 = vmatpush.xpose.msra.mxu2 %v3506_v53  ;;  %v776_v49 = vand.u32 4294901760, %v775_v23 }
  0x5e   : > { %664 = vmatpush.xpose.msra.mxu0 %v3502_v58  ;;  %765 = vmatpush.xpose.msra.mxu1 %v764_v4  ;;  %v580_v4 = vsel %vm578_vm0, %v3541_v31, 0 }
  0x5f   : > { %877 = vmatpush.xpose.msra.mxu3 %v3502_v58  ;;  %v665_v29 = vand.u32 4294901760, %v580_v4 }
  0x60   : > { %834 = vmatpush.xpose.msra.mxu2 %v3516_v11 }
  0x61   : > { %v666_v57 = vsub.f32 %v580_v4, %v665_v29 }
  0x62   : > { %894 = vmatpush.xpose.msrb.mxu0 %v684_v18  ;;  %771 = vmatpush.xpose.msra.mxu1 %v770_v46  ;;  %v559_v18 = vld [vmem:[%s396_s23 + $0x8] sm:$0xff]  ;;  %s4167_s23 = scalar_lea.vmem [#allocation2], %s2834_s22  ;;  %s4533_s22 = sshll.u32 %s3133_s27, 5 }
  0x63   : > { %v667_v13 = vand.u32 4294901760, %v666_v57  ;;  %837 = vmatmul.f32.vlgmr.msra.gmra.mxu2 %v666_v57  ;;  %v3550_v46 = vmul.f32 0.17677669, %v559_v18 }
  0x65   : > { %v668_v23 = vsub.f32 %v666_v57, %v667_v13  ;;  %881 = vmatmul.f32.vlgmr.msra.gmra.mxu3 %v667_v13  ;;  %v583_v14 = vsel %vm578_vm0, %v3550_v46, 0  ;;  %1567 = vrot.lane.b32.xlu2 %v3550_v46, %s3143_s10  ;;  %v3675_v46 = vsub.f32 %v1053_v62, %v3668_v51 }
  0x66   : > { %898 = vmatpush.xpose.msrb.mxu0 %v690_v19  ;;  %777 = vmatpush.xpose.msra.mxu1 %v776_v49  ;;  %v673_v19 = vand.u32 4294901760, %v583_v14 }
  0x67   : > { %v669_v16 = vand.u32 4294901760, %v668_v23 }
  0x69   : > { %779 = vmatmul.f32.vlgmr.msra.gmra.mxu1 %v665_v29  ;;  %670 = vmatmul.f32.vlgmr.msra.gmra.mxu0 %v669_v16 }
  0x6a   : > { %902 = vmatpush.xpose.msrb.mxu0 %v696_v24  ;;  %965 = vmatpush.xpose.msrb.mxu1 %v3282_v8  ;;  %v674_v8 = vsub.f32 %v583_v14, %v673_v19  ;;  %v1112_v14 = vand.u32 4294901760, %v3675_v46 }
  0x6c   : > { %v675_v24 = vand.u32 4294901760, %v674_v8  ;;  %842 = vmatmul.f32.gmra.mxu2 %v674_v8 }
  0x6e   : > { %906 = vmatpush.xpose.msrb.mxu0 %v702_v32  ;;  %967 = vmatpush.xpose.msrb.mxu1 %v3284_v9  ;;  %v676_v49 = vsub.f32 %v674_v8, %v675_v24  ;;  %v4548_v32 = vand.u32 4294901760, %v3492_v44  ;;  %v1052_v8 = vld [vmem:[%s3662_s18 + $0x68] sm:$0xff] }
  0x6f   : > { %887 = vmatmul.f32.gmra.mxu3 %v675_v24  ;;  %v3687_v24 = vld [vmem:[%s3662_s18 + $0x60] sm:$0xff] }
  0x70   : > { %v677_v9 = vand.u32 4294901760, %v676_v49  ;;  %v3690_v49 = vld [vmem:[%s3662_s18 + $0x58] sm:$0xff] }
  0x71   : > { %783 = vmatmul.f32.gmra.mxu1 %v673_v19 }
  0x72   : > { %910 = vmatpush.xpose.msrb.mxu0 %v708_v39  ;;  %969 = vmatpush.xpose.msrb.mxu1 %v3286_v10  ;;  %v4543_v10 = vand.u32 4294901760, %v3409_v61 }
  0x73   : > { %678 = vmatmul.f32.gmra.mxu0 %v677_v9 }
  0x76   : > { %914 = vmatpush.xpose.msrb.mxu0 %v714_v43  ;;  %971 = vmatpush.xpose.msrb.mxu1 %v3290_v12  ;;  %v4545_v12 = vand.u32 4294901760, %v3441_v30 }
  0x7a   : > { %918 = vmatpush.xpose.msrb.mxu0 %v720_v52  ;;  %973 = vmatpush.xpose.msrb.mxu1 %v3311_v20  ;;  %v4546_v20 = vand.u32 4294901760, %v3451_v38 }
  0x7e   : > { %922 = vmatpush.xpose.msrb.mxu0 %v726_v60  ;;  %975 = vmatpush.xpose.msrb.mxu1 %v3331_v28  ;;  %v4547_v28 = vand.u32 4294901760, %v3475_v3 }
  0x82   : > { %926 = vmatpush.xpose.msrb.mxu0 %v4543_v10  ;;  %977 = vmatpush.xpose.msrb.mxu1 %v3348_v35  ;;  %v4550_v35 = vand.u32 4294901760, %v3516_v11 }
  0x86   : > { %930 = vmatpush.xpose.msrb.mxu0 %v4544_v25  ;;  %979 = vmatpush.xpose.msrb.mxu1 %v3365_v42  ;;  %v3692_v25 = vand.u32 4294901760, %v1052_v8 }
  0x8a   : > { %934 = vmatpush.xpose.msrb.mxu0 %v4545_v12  ;;  %981 = vmatpush.xpose.msrb.mxu1 %v3385_v50  ;;  %v432_v50 = vlaneseq  ;;  %v3695_v12 = vand.u32 4294901760, %v3687_v24 }
  0x8c   : > { %v3595_v60 = vshrl.u32 %v432_v50, 7  ;;  %v3597_v61 = vand.u32 127, %v432_v50 }
  0x8e   : > { %938 = vmatpush.xpose.msrb.mxu0 %v4546_v20  ;;  %983 = vmatpush.xpose.msrb.mxu1 %v3399_v56  ;;  %vm440_vm1 = vcmp.ge.s32.totalorder %v3597_v61, 16  ;;  %vm441_vm2 = vcmp.gt.s32.totalorder %v3597_v61, %v3595_v60  ;;  %v3609_v3 = vadd.s32 8, %v3595_v60  ;;  %v1049_v20 = vld [vmem:[%s3662_s18 + $0x50] sm:$0xff] }
  0x8f   : > { %vm3604_vm3 = vmor %vm441_vm2, %vm440_vm1 }
  0x90   : > { %vm442_vm4 = vcmp.gt.s32.totalorder %v3597_v61, %v3609_v3 }
  0x91   : > { %vm3617_vm5 = vmor %vm442_vm4, %vm440_vm1 }
  0x92   : > { %942 = vmatpush.xpose.msrb.mxu0 %v4547_v28  ;;  %985 = vmatpush.xpose.msrb.mxu1 %v3416_v63  ;;  %v1048_v28 = vld [vmem:[%s3662_s18 + $0x48] sm:$0xff] }
  0x96   : > { %946 = vmatpush.xpose.msrb.mxu0 %v4548_v32  ;;  %987 = vmatpush.xpose.msrb.mxu1 %v3433_v22  ;;  %v3701_v32 = vand.u32 4294901760, %v3690_v49 }
  0x9a   : > { %950 = vmatpush.xpose.msrb.mxu0 %v4549_v33  ;;  %989 = vmatpush.xpose.msrb.mxu1 %v3457_v45  ;;  %v3703_v33 = vand.u32 4294901760, %v1049_v20 }
  0x9e   : > { %954 = vmatpush.xpose.msrb.mxu0 %v4550_v35  ;;  %991 = vmatpush.xpose.msrb.mxu1 %v3472_v59  ;;  %v3705_v35 = vand.u32 4294901760, %v1048_v28 }
  0xa1   : > { %956 = vmatmul.f32.vlgmr.msrb.gmra.mxu0 %v665_v29 }
  0xa2   : > { %993 = vmatpush.xpose.msrb.mxu1 %v3488_v40 }
  0xa6   : > { %995 = vmatpush.xpose.msrb.mxu1 %v3502_v58 }
  0xa9   : > { %960 = vmatmul.f32.gmra.mxu0 %v673_v19  ;;  %997 = vmatmul.f32.vlgmr.msrb.gmra.mxu1 %v665_v29 }
  0xb1   : > { %1001 = vmatmul.f32.gmra.mxu1 %v673_v19  ;;  %v1113_v19 = vsub.f32 %v3675_v46, %v1112_v14 }
  0xb3   : > { %v1114_v10 = vand.u32 4294901760, %v1113_v19 }
  0xe6   : > { %v671_v36 = vpop.f32.mrf.mxu0  ;;  %v780_v39 = vpop.f32.mrf.mxu1 }
  0xe7   : > { %v838_v43 = vpop.f32.mrf.mxu2  ;;  %v781_v47 = vadd.f32 %v780_v39, %v671_v36  ;;  %v1047_v36 = vld [vmem:[%s3662_s18 + $0x40] sm:$0xff]  ;;  %v1046_v39 = vld [vmem:[%s3662_s18 + $0x38] sm:$0xff] }
  0xe8   : > { %v882_v52 = vpop.f32.mrf.mxu3  ;;  %v3719_v50 = vand.u32 4294901760, %v1047_v36 }
  0xe9   : > { %v839_v56 = vadd.f32 %v838_v43, %v781_v47  ;;  %v3712_v43 = vsub.f32 %v1052_v8, %v3692_v25  ;;  %v3716_v47 = vsub.f32 %v3687_v24, %v3695_v12 }
  0xeb   : > { %v883_v11 = vadd.f32 %v882_v52, %v839_v56  ;;  %v3721_v52 = vand.u32 4294901760, %v1046_v39  ;;  %v3728_v56 = vsub.f32 %v1049_v20, %v3703_v33 }
  0xee   : > { %v784_v54 = vpop.f32.mrf.mxu1 }
  0xef   : > { %v843_v22 = vpop.f32.mrf.mxu2 }
  0xf0   : > { %v679_v42 = vpop.f32.mrf.mxu0 }
  0xf1   : > { %v785_v15 = vadd.f32 %v784_v54, %v679_v42  ;;  %v1045_v42 = vld [vmem:[%s3662_s18 + $0x30] sm:$0xff]  ;;  %v3725_v54 = vsub.f32 %v3690_v49, %v3701_v32 }
  0xf2   : > { %v888_v40 = vpop.f32.mrf.mxu3 }
  0xf3   : > { %v844_v53 = vadd.f32 %v843_v22, %v785_v15  ;;  %v1118_v15 = vand.u32 4294901760, %v3712_v43  ;;  %v1124_v22 = vand.u32 4294901760, %v3716_v47 }
  0xf5   : > { %v889_v57 = vadd.f32 %v888_v40, %v844_v53  ;;  %v1136_v53 = vand.u32 4294901760, %v3728_v56  ;;  %v1119_v40 = vsub.f32 %v3712_v43, %v1118_v15 }
 0x11e   : > { %v957_v63 = vpop.f32.mrf.mxu0 }
 0x11f   : > { %v958_v30 = vadd.f32 %v957_v63, %v883_v11  ;;  %v3731_v63 = vsub.f32 %v1048_v28, %v3705_v35  ;;  %v3733_v11 = vand.u32 4294901760, %v1045_v42 }
 0x126   : > { %v998_v38 = vpop.f32.mrf.mxu1  ;;  %v961_v58 = vpop.f32.mrf.mxu0 }
 0x127   : > { %v999_v59 = vadd.f32 %v998_v38, %v958_v30  ;;  %v962_v27 = vadd.f32 %v961_v58, %v889_v57  ;;  %v3740_v30 = vsub.f32 %v1047_v36, %v3719_v50  ;;  %v1130_v38 = vand.u32 4294901760, %v3725_v54 }
 0x128   : > { %v1142_v58 = vand.u32 4294901760, %v3731_v63 }
 0x129   : > { %v1005_v44 = vsel %vm3604_vm3, -inf, %v999_v59  ;;  %v3745_v59 = vsub.f32 %v1046_v39, %v3721_v52  ;;  %v1131_v57 = vsub.f32 %v3725_v54, %v1130_v38  ;;  %v1039_v39 = vld [vmem:[%s3662_s18] sm:$0xff] }
 0x12a   : > { %1007 = vmax.xlane.f32.xlu0 %v1005_v44 }
 0x12e   : > { %v1002_v4 = vpop.f32.mrf.mxu1 }
 0x12f   : > { %v1003_v13 = vadd.f32 %v1002_v4, %v962_v27  ;;  %v1148_v27 = vand.u32 4294901760, %v3740_v30  ;;  %v3757_v4 = vsub.f32 %v1045_v42, %v3733_v11 }
 0x131   : > { %v1006_v18 = vsel %vm3617_vm5, -inf, %v1003_v13  ;;  %v1044_v13 = vld [vmem:[%s3662_s18 + $0x28] sm:$0xff] }
 0x132   : > { %1009 = vmax.xlane.f32.xlu0 %v1006_v18 }
 0x146   : > { %1611 = vrot.lane.b32.xlu0 %v3268_v2, %s3143_s10 }
 0x14e   : > { %1601 = vrot.lane.b32.xlu0 %v3344_v34, %s3143_s10 }
 0x156   : > { %1595 = vrot.lane.b32.xlu0 %v3395_v55, %s3143_s10  ;;  %v1054_v55 = vld [vmem:[%s3662_s18 + $0x78] sm:$0xff] }
 0x157   : > { %2122 = vrot.lane.b32.xlu2 %v1054_v55, %s3143_s10 }
 0x15e   : > { %1589 = vrot.lane.b32.xlu0 %v3447_v37, %s3143_s10  ;;  %v3666_v37 = vand.u32 4294901760, %v1054_v55 }
 0x15f   : > { %2120 = vrot.lane.b32.xlu2 %v1053_v62, %s3143_s10  ;;  %v3771_v62 = vand.u32 4294901760, %v1044_v13 }
 0x160   : > { %1056 = vmatpush.msrb.mxu2 %v3666_v37  ;;  %1387 = vmatpush.msra.mxu1 %v3666_v37 }
 0x162   : > { %1058 = vmatpush.msrb.mxu2 %v3668_v51  ;;  %1389 = vmatpush.msra.mxu1 %v3668_v51 }
 0x164   : > { %1060 = vmatpush.msrb.mxu2 %v3692_v25  ;;  %1391 = vmatpush.msra.mxu1 %v3692_v25 }
 0x166   : > { %1565 = vrot.lane.b32.xlu0 %v3541_v31, %s3143_s10  ;;  %v3672_v31 = vsub.f32 %v1054_v55, %v3666_v37  ;;  %1062 = vmatpush.msrb.mxu2 %v3695_v12  ;;  %v1143_v55 = vsub.f32 %v3731_v63, %v1142_v58 }
 0x167   : > { %1393 = vmatpush.msra.mxu1 %v3695_v12  ;;  %2118 = vrot.lane.b32.xlu2 %v1052_v8, %s3143_s10 }
 0x168   : > { %v1106_v23 = vand.u32 4294901760, %v3672_v31  ;;  %1064 = vmatpush.msrb.mxu2 %v3701_v32  ;;  %v1144_v42 = vand.u32 4294901760, %v1143_v55 }
 0x169   : > { %1395 = vmatpush.msra.mxu1 %v3701_v32 }
 0x16a   : > { %v1107_v16 = vsub.f32 %v3672_v31, %v1106_v23  ;;  %1316 = vmatpush.msra.mxu0 %v1106_v23  ;;  %1066 = vmatpush.msrb.mxu2 %v3703_v33 }
 0x16b   : > { %1397 = vmatpush.msra.mxu1 %v3703_v33 }
 0x16c   : > { %v1108_v9 = vand.u32 4294901760, %v1107_v16  ;;  %1320 = vmatpush.msra.mxu0 %v1112_v14  ;;  %1068 = vmatpush.msrb.mxu2 %v3705_v35  ;;  %v1149_v14 = vsub.f32 %v3740_v30, %v1148_v27  ;;  %v1160_v16 = vand.u32 4294901760, %v3757_v4 }
 0x16d   : > { %1399 = vmatpush.msra.mxu1 %v3705_v35 }
 0x16e   : > { %2112 = vrot.lane.b32.xlu0 %v1049_v20, %s3143_s10  ;;  %1109 = vmatpush.msrb.mxu3 %v1108_v9  ;;  %v1040_v9 = vld [vmem:[%s3662_s18 + $0x8] sm:$0xff] }
 0x16f   : > { %1324 = vmatpush.msra.mxu0 %v1118_v15  ;;  %1070 = vmatpush.msrb.mxu2 %v3719_v50 }
 0x170   : > { %1115 = vmatpush.msrb.mxu3 %v1114_v10  ;;  %v3782_v10 = vsub.f32 %v1044_v13, %v3771_v62  ;;  %1401 = vmatpush.msra.mxu1 %v3719_v50  ;;  %v3808_v13 = vand.u32 4294901760, %v1039_v39 }
 0x171   : > { %1328 = vmatpush.msra.mxu0 %v1124_v22  ;;  %1072 = vmatpush.msrb.mxu2 %v3721_v52 }
 0x172   : > { %v1166_v15 = vand.u32 4294901760, %v3782_v10  ;;  %1403 = vmatpush.msra.mxu1 %v3721_v52  ;;  %2116 = vrot.lane.b32.xlu2 %v3687_v24, %s3143_s10 }
 0x173   : > { %1332 = vmatpush.msra.mxu0 %v1130_v38  ;;  %v3798_v38 = vand.u32 4294901760, %v1040_v9  ;;  %1074 = vmatpush.msrb.mxu2 %v3733_v11 }
 0x174   : > { %1405 = vmatpush.msra.mxu1 %v3733_v11 }
 0x175   : > { %1336 = vmatpush.msra.mxu0 %v1136_v53  ;;  %1076 = vmatpush.msrb.mxu2 %v3771_v62 }
 0x176   : > { %1407 = vmatpush.msra.mxu1 %v3771_v62 }
 0x177   : > { %1340 = vmatpush.msra.mxu0 %v1142_v58 }
 0x179   : > { %1344 = vmatpush.msra.mxu0 %v1148_v27 }
 0x19d   : > { %v1008_v0 = vpop.xlane.xlu0 %1007 }
 0x19e   : > { %v1011_v1 = vsub.f32 %v1005_v44, %v1008_v0  ;;  %v1125_v44 = vsub.f32 %v3716_v47, %v1124_v22  ;;  %v1120_v0 = vand.u32 4294901760, %v1119_v40  ;;  %v1161_v40 = vsub.f32 %v3757_v4, %v1160_v16 }
 0x1a0   : > { %v1013_v2 = vmul.f32 1.442695, %v1011_v1  ;;  %v1126_v1 = vand.u32 4294901760, %v1125_v44  ;;  %1121 = vmatpush.msrb.mxu3 %v1120_v0  ;;  %v3815_v0 = vsub.f32 %v1040_v9, %v3798_v38 }
 0x1a2   : > { %2961 = vpow2.f32 %v1013_v2  ;;  %v1137_v2 = vsub.f32 %v3728_v56, %v1136_v53  ;;  %1127 = vmatpush.msrb.mxu3 %v1126_v1  ;;  %v1150_v53 = vand.u32 4294901760, %v1149_v14  ;;  %v1162_v1 = vand.u32 4294901760, %v1161_v40 }
 0x1a4   : > { %v1138_v8 = vand.u32 4294901760, %v1137_v2 }
 0x1a5   : > { %v1010_v7 = vpop.xlane.xlu0 %1009 }
 0x1a6   : > { %v1012_v17 = vsub.f32 %v1006_v18, %v1010_v7  ;;  %v1043_v18 = vld [vmem:[%s3662_s18 + $0x20] sm:$0xff]  ;;  %v1042_v7 = vld [vmem:[%s3662_s18 + $0x18] sm:$0xff] }
 0x1a7   : > { %v3773_v23 = vand.u32 4294901760, %v1043_v18  ;;  %v3777_v19 = vand.u32 4294901760, %v1042_v7 }
 0x1a8   : > { %v3651_v26 = vpop.eup %2961  ;;  %v1015_v34 = vmul.f32 1.442695, %v1012_v17  ;;  %v1041_v17 = vld [vmem:[%s3662_s18 + $0x10] sm:$0xff] }
 0x1a9   : > { %1017 = vadd.xlane.f32.xlu1 %v3651_v26  ;;  %v3786_v20 = vsub.f32 %v1043_v18, %v3773_v23  ;;  %v3788_v28 = vand.u32 4294901760, %v1041_v17  ;;  %v3796_v22 = vsub.f32 %v1042_v7, %v3777_v19  ;;  %1078 = vmatpush.msrb.mxu2 %v3773_v23  ;;  %v3822_v7 = vsub.f32 %v1039_v39, %v3808_v13 }
 0x1aa   : > { %2963 = vpow2.f32 %v1015_v34  ;;  %v1132_v34 = vand.u32 4294901760, %v1131_v57  ;;  %1409 = vmatpush.msra.mxu1 %v3773_v23 }
 0x1ab   : > { %v1172_v44 = vand.u32 4294901760, %v3786_v20  ;;  %v3806_v57 = vsub.f32 %v1041_v17, %v3788_v28  ;;  %v1178_v58 = vand.u32 4294901760, %v3796_v22  ;;  %1080 = vmatpush.msrb.mxu2 %v3777_v19 }
 0x1ac   : > { %1133 = vmatpush.msrb.mxu3 %v1132_v34  ;;  %v1190_v34 = vand.u32 4294901760, %v3815_v0  ;;  %1411 = vmatpush.msra.mxu1 %v3777_v19 }
 0x1ad   : > { %v1173_v27 = vsub.f32 %v3786_v20, %v1172_v44  ;;  %v1184_v2 = vand.u32 4294901760, %v3806_v57  ;;  %1082 = vmatpush.msrb.mxu2 %v3788_v28 }
 0x1ae   : > { %1139 = vmatpush.msrb.mxu3 %v1138_v8  ;;  %v1191_v8 = vsub.f32 %v3815_v0, %v1190_v34  ;;  %1413 = vmatpush.msra.mxu1 %v3788_v28 }
 0x1af   : > { %v1174_v55 = vand.u32 4294901760, %v1173_v27  ;;  %v1185_v14 = vsub.f32 %v3806_v57, %v1184_v2  ;;  %1084 = vmatpush.msrb.mxu2 %v3798_v38 }
 0x1b0   : > { %v3654_v41 = vpop.eup %2963  ;;  %1145 = vmatpush.msrb.mxu3 %v1144_v42  ;;  %v1192_v39 = vand.u32 4294901760, %v1191_v8  ;;  %1415 = vmatpush.msra.mxu1 %v3798_v38 }
 0x1b1   : > { %1019 = vadd.xlane.f32.xlu1 %v3654_v41  ;;  %1086 = vmatpush.msrb.mxu2 %v3808_v13 }
 0x1b2   : > { %1151 = vmatpush.msrb.mxu3 %v1150_v53  ;;  %1417 = vmatpush.msra.mxu1 %v3808_v13 }
 0x1b3   : > { %1211 = vmatpush.msra.mxu2 %v3672_v31 }
 0x1b5   : > { %1214 = vmatpush.msra.mxu2 %v3675_v46 }
 0x1b7   : > { %1217 = vmatpush.msra.mxu2 %v3712_v43 }
 0x1b9   : > { %1220 = vmatpush.msra.mxu2 %v3716_v47 }
 0x1bb   : > { %1223 = vmatpush.msra.mxu2 %v3725_v54 }
 0x1bd   : > { %1226 = vmatpush.msra.mxu2 %v3728_v56 }
 0x1bf   : > { %1229 = vmatpush.msra.mxu2 %v3731_v63 }
 0x1c1   : > { %1232 = vmatpush.msra.mxu2 %v3740_v30 }
 0x1c3   : > { %1235 = vmatpush.msra.mxu2 %v3745_v59 }
 0x1c5   : > { %1238 = vmatpush.msra.mxu2 %v3757_v4 }
 0x1c7   : > { %1241 = vmatpush.msra.mxu2 %v3782_v10 }
 0x1c9   : > { %1244 = vmatpush.msra.mxu2 %v3786_v20 }
 0x1ca   : > { %1609 = vrot.lane.b32.xlu1 %v3277_v6, %s3143_s10  ;;  %v1154_v6 = vand.u32 4294901760, %v3745_v59 }
 0x1cb   : > { %1247 = vmatpush.msra.mxu2 %v3796_v22 }
 0x1cc   : > { %v1155_v36 = vsub.f32 %v3745_v59, %v1154_v6  ;;  %1348 = vmatpush.msra.mxu0 %v1154_v6  ;;  %v1179_v6 = vsub.f32 %v3796_v22, %v1178_v58 }
 0x1cd   : > { %1250 = vmatpush.msra.mxu2 %v3806_v57 }
 0x1ce   : > { %v1156_v18 = vand.u32 4294901760, %v1155_v36  ;;  %1352 = vmatpush.msra.mxu0 %v1160_v16  ;;  %v1196_v16 = vand.u32 4294901760, %v3822_v7  ;;  %v1180_v9 = vand.u32 4294901760, %v1179_v6 }
 0x1cf   : > { %1253 = vmatpush.msra.mxu2 %v3815_v0 }
 0x1d0   : > { %1157 = vmatpush.msrb.mxu3 %v1156_v18  ;;  %1356 = vmatpush.msra.mxu0 %v1166_v15  ;;  %v1197_v36 = vsub.f32 %v3822_v7, %v1196_v16 }
 0x1d1   : > { %1256 = vmatpush.msra.mxu2 %v3822_v7 }
 0x1d2   : > { %1597 = vrot.lane.b32.xlu1 %v3378_v48, %s3143_s10  ;;  %v1167_v48 = vsub.f32 %v3782_v10, %v1166_v15  ;;  %1163 = vmatpush.msrb.mxu3 %v1162_v1  ;;  %v1198_v42 = vand.u32 4294901760, %v1197_v36 }
 0x1d3   : > { %1360 = vmatpush.msra.mxu0 %v1172_v44 }
 0x1d4   : > { %v1168_v17 = vand.u32 4294901760, %v1167_v48 }
 0x1d5   : > { %1364 = vmatpush.msra.mxu0 %v1178_v58 }
 0x1d6   : > { %1169 = vmatpush.msrb.mxu3 %v1168_v17 }
 0x1d7   : > { %1368 = vmatpush.msra.mxu0 %v1184_v2 }
 0x1d8   : > { %1175 = vmatpush.msrb.mxu3 %v1174_v55 }
 0x1d9   : > { %1372 = vmatpush.msra.mxu0 %v1190_v34 }
 0x1da   : > { %1591 = vrot.lane.b32.xlu1 %v3430_v21, %s3143_s10  ;;  %v1186_v21 = vand.u32 4294901760, %v1185_v14  ;;  %1181 = vmatpush.msrb.mxu3 %v1180_v9 }
 0x1db   : > { %1376 = vmatpush.msra.mxu0 %v1196_v16 }
 0x1dc   : > { %1187 = vmatpush.msrb.mxu3 %v1186_v21 }
 0x1de   : > { %1193 = vmatpush.msrb.mxu3 %v1192_v39 }
 0x1e0   : > { %1199 = vmatpush.msrb.mxu3 %v1198_v42 }
 0x1e2   : > { %1585 = vrot.lane.b32.xlu1 %v3481_v5, %s3143_s10  ;;  %1269 = vmatpush.msra.mxu3 %v3666_v37  ;;  %v1616_v5 = vpop.permute.xlu2 %1615 }
 0x1e3   : > { %v1651_v37 = vsel %vm578_vm0, %v1616_v5, 0 }
 0x1e4   : > { %1271 = vmatpush.msra.mxu3 %v3668_v51  ;;  %v3881_v51 = vand.u32 4294901760, %v1651_v37 }
 0x1e6   : > { %1273 = vmatpush.msra.mxu3 %v3692_v25  ;;  %v3884_v31 = vsub.f32 %v1651_v37, %v3881_v51  ;;  %1867 = vmatpush.xpose.msrb.mxu1 %v3881_v51 }
 0x1e8   : > { %1275 = vmatpush.msra.mxu3 %v3695_v12  ;;  %1809 = vmatpush.xpose.msrb.mxu0 %v3884_v31  ;;  %v1612_v12 = vpop.permute.xlu0 %1611  ;;  %v1704_v59 = vand.u32 4294901760, %v3884_v31 }
 0x1ea   : > { %2114 = vrot.lane.b32.xlu1 %v3690_v49, %s3143_s10  ;;  %1277 = vmatpush.msra.mxu3 %v3701_v32  ;;  %v1614_v46 = vpop.permute.xlu2 %1613  ;;  %v1647_v32 = vsel %vm578_vm0, %v1612_v12, 0  ;;  %v1705_v20 = vsub.f32 %v3884_v31, %v1704_v59 }
 0x1eb   : > { %v1649_v24 = vsel %vm578_vm0, %v1614_v46, 0 }
 0x1ec   : > { %1279 = vmatpush.msra.mxu3 %v3703_v33  ;;  %v3889_v49 = vand.u32 4294901760, %v1649_v24  ;;  %v3897_v33 = vand.u32 4294901760, %v1647_v32  ;;  %v1706_v57 = vand.u32 4294901760, %v1705_v20 }
 0x1ee   : > { %1281 = vmatpush.msra.mxu3 %v3705_v35  ;;  %v3892_v25 = vsub.f32 %v1649_v24, %v3889_v49  ;;  %1869 = vmatpush.xpose.msrb.mxu1 %v3889_v49  ;;  %v3900_v35 = vsub.f32 %v1647_v32, %v3897_v33 }
 0x1f0   : > { %1283 = vmatpush.msra.mxu3 %v3719_v50  ;;  %1812 = vmatpush.xpose.msrb.mxu0 %v3892_v25  ;;  %v1716_v44 = vand.u32 4294901760, %v3900_v35  ;;  %v1602_v46 = vpop.permute.xlu0 %1601 }
 0x1f2   : > { %1285 = vmatpush.msra.mxu3 %v3721_v52  ;;  %1871 = vmatpush.xpose.msrb.mxu1 %v3897_v33  ;;  %v1608_v56 = vpop.permute.xlu2 %1607  ;;  %v1717_v0 = vsub.f32 %v3900_v35, %v1716_v44 }
 0x1f3   : > { %v1643_v27 = vsel %vm578_vm0, %v1608_v56, 0 }
 0x1f4   : > { %1287 = vmatpush.msra.mxu3 %v3733_v11  ;;  %1815 = vmatpush.xpose.msrb.mxu0 %v3900_v35  ;;  %v1718_v6 = vand.u32 4294901760, %v1717_v0  ;;  %v3933_v34 = vand.u32 4294901760, %v1643_v27 }
 0x1f6   : > { %1289 = vmatpush.msra.mxu3 %v3771_v62  ;;  %v3944_v36 = vsub.f32 %v1643_v27, %v3933_v34 }
 0x1f8   : > { %1291 = vmatpush.msra.mxu3 %v3773_v23  ;;  %v1710_v23 = vand.u32 4294901760, %v3892_v25 }
 0x1fa   : > { %1293 = vmatpush.msra.mxu3 %v3777_v19  ;;  %v1711_v22 = vsub.f32 %v3892_v25, %v1710_v23 }
 0x1fc   : > { %1295 = vmatpush.msra.mxu3 %v3788_v28  ;;  %v1712_v18 = vand.u32 4294901760, %v1711_v22 }
 0x1fe   : > { %1297 = vmatpush.msra.mxu3 %v3798_v38  ;;  %v1606_v38 = vpop.permute.xlu2 %1605 }
 0x1ff   : > { %v1641_v16 = vsel %vm578_vm0, %v1606_v38, 0 }
 0x200   : > { %1299 = vmatpush.msra.mxu3 %v3808_v13  ;;  %v3946_v39 = vand.u32 4294901760, %v1641_v16 }
 0x206   : > { %v1604_v55 = vpop.permute.xlu2 %1603 }
 0x207   : > { %v1639_v42 = vsel %vm578_vm0, %v1604_v55, 0 }
 0x208   : > { %v3957_v32 = vand.u32 4294901760, %v1639_v42 }
 0x20a   : > { %v3970_v56 = vsub.f32 %v1639_v42, %v3957_v32 }
 0x21c   : > { %v1018_v43 = vpop.xlane.xlu1 %1017 }
 0x21d   : > { %2965 = vrcp.f32 %v1018_v43 }
 0x223   : > { %v2966_v47 = vpop.eup %2965 }
 0x224   : > { %v1023_v50 = vmul.f32 %v2966_v47, %v1018_v43  ;;  %v1020_v52 = vpop.xlane.xlu1 %1019 }
 0x225   : > { %2967 = vrcp.f32 %v1020_v52 }
 0x226   : > { %v1025_v54 = vsub.f32 2.0, %v1023_v50  ;;  %v1637_v50 = vsel %vm578_vm0, %v1602_v46, 0 }
 0x228   : > { %v1027_v63 = vmul.f32 %v2966_v47, %v1025_v54  ;;  %v3961_v47 = vsub.f32 %v1641_v16, %v3946_v39  ;;  %v1600_v54 = vpop.permute.xlu2 %1599 }
 0x22a   : > { %v1029_v11 = vmul.f32 %v1027_v63, %v1018_v43  ;;  %v1728_v43 = vand.u32 4294901760, %v3944_v36 }
 0x22b   : > { %v2968_v30 = vpop.eup %2967 }
 0x22c   : > { %v1031_v4 = vsub.f32 2.0, %v1029_v11  ;;  %v1024_v62 = vmul.f32 %v2968_v30, %v1020_v52  ;;  %v3973_v11 = vand.u32 4294901760, %v1637_v50 }
 0x22e   : > { %v1033_v19 = vmul.f32 %v1031_v4, %v1027_v63  ;;  %v1026_v10 = vsub.f32 2.0, %v1024_v62  ;;  %v1729_v4 = vsub.f32 %v3944_v36, %v1728_v43  ;;  %v1635_v62 = vsel %vm578_vm0, %v1600_v54, 0 }
 0x22f   : > { %v3985_v20 = vsub.f32 %v1637_v50, %v3973_v11 }
 0x230   : > { %v1035_v28 = vmul.f32 %v3651_v26, %v1033_v19  ;;  %v1028_v15 = vmul.f32 %v2968_v30, %v1026_v10  ;;  %v1734_v30 = vand.u32 4294901760, %v3961_v47  ;;  %v1740_v10 = vand.u32 4294901760, %v3970_v56 }
 0x232   : > { %v1030_v40 = vmul.f32 %v1028_v15, %v1020_v52  ;;  %v1087_v53 = vand.u32 4294901760, %v1035_v28  ;;  %1037 = vst [vmem:[%s3920_s21] sm:$0xff] %v1035_v28  ;;  %v1735_v22 = vsub.f32 %v3961_v47, %v1734_v30 }
 0x234   : > { %v1032_v13 = vsub.f32 2.0, %v1030_v40  ;;  %1201 = vmatmul.f32.vlgmr.msrb.gmra.mxu3 %v1087_v53  ;;  %1378 = vmatmul.f32.vlgmr.msra.gmra.mxu0 %v1087_v53  ;;  %v3923_v26 = vsub.f32 %v1035_v28, %v1087_v53  ;;  %v1730_v28 = vand.u32 4294901760, %v1729_v4  ;;  %v1596_v40 = vpop.permute.xlu0 %1595 }
 0x235   : > { %1419 = vmatmul.f32.vlgmr.msra.gmra.mxu1 %v1087_v53  ;;  %1707 = vmatpush.xpose.msrb.mxu3 %v1706_v57  ;;  %v1746_v53 = vand.u32 4294901760, %v3985_v20  ;;  %v1741_v57 = vsub.f32 %v3970_v56, %v1740_v10 }
 0x236   : > { %v1034_v48 = vmul.f32 %v1032_v13, %v1028_v15  ;;  %v1089_v58 = vand.u32 4294901760, %v3923_v26  ;;  %v3987_v15 = vand.u32 4294901760, %v1635_v62 }
 0x237   : > { %v1742_v0 = vand.u32 4294901760, %v1741_v57 }
 0x238   : > { %v1036_v1 = vmul.f32 %v3654_v41, %v1034_v48  ;;  %v1090_v2 = vsub.f32 %v3923_v26, %v1089_v58  ;;  %v4002_v13 = vsub.f32 %v1635_v62, %v3987_v15  ;;  %v1631_v48 = vsel %vm578_vm0, %v1596_v40, 0 }
 0x239   : > { %1713 = vmatpush.xpose.msrb.mxu3 %v1712_v18 }
 0x23a   : > { %v1091_v7 = vand.u32 4294901760, %v1090_v2  ;;  %v1095_v17 = vand.u32 4294901760, %v1036_v1  ;;  %1038 = vst [vmem:[%s3920_s21 + $0x8] sm:$0xff] %v1036_v1  ;;  %v1752_v27 = vand.u32 4294901760, %v4002_v13 }
 0x23c   : > { %1092 = vmatmul.f32.vlgmr.msrb.gmra.mxu2 %v1091_v7  ;;  %1205 = vmatmul.f32.gmra.mxu3 %v1095_v17  ;;  %v1610_v14 = vpop.permute.xlu1 %1609  ;;  %v3936_v9 = vsub.f32 %v1036_v1, %v1095_v17  ;;  %v1747_v1 = vsub.f32 %v3985_v20, %v1746_v53  ;;  %v4017_v7 = vand.u32 4294901760, %v1631_v48  ;;  %v1590_v42 = vpop.permute.xlu0 %1589 }
 0x23d   : > { %1382 = vmatmul.f32.gmra.mxu0 %v1095_v17  ;;  %1423 = vmatmul.f32.gmra.mxu1 %v1095_v17  ;;  %v1645_v41 = vsel %vm578_vm0, %v1610_v14, 0  ;;  %v1625_v54 = vsel %vm578_vm0, %v1590_v42, 0 }
 0x23e   : > { %1654 = vmatpush.xpose.msrb.mxu2 %v3881_v51  ;;  %v3940_v8 = vand.u32 4294901760, %v1645_v41  ;;  %1719 = vmatpush.xpose.msrb.mxu3 %v1718_v6  ;;  %v1097_v21 = vand.u32 4294901760, %v3936_v9  ;;  %v4028_v16 = vsub.f32 %v1631_v48, %v4017_v7 }
 0x240   : > { %v3950_v5 = vsub.f32 %v1645_v41, %v3940_v8  ;;  %1873 = vmatpush.xpose.msrb.mxu1 %v3940_v8  ;;  %v1098_v37 = vsub.f32 %v3936_v9, %v1097_v21  ;;  %v1748_v41 = vand.u32 4294901760, %v1747_v1  ;;  %v1764_v46 = vand.u32 4294901760, %v4028_v16 }
 0x242   : > { %v1722_v24 = vand.u32 4294901760, %v3950_v5  ;;  %1656 = vmatpush.xpose.msrb.mxu2 %v3889_v49  ;;  %1818 = vmatpush.xpose.msrb.mxu0 %v3950_v5  ;;  %v1099_v12 = vand.u32 4294901760, %v1098_v37 }
 0x244   : > { %1100 = vmatmul.f32.gmra.mxu2 %v1099_v12  ;;  %1303 = vmatmul.f32.vlgmr.msra.gmra.mxu3 %v1089_v58  ;;  %v1723_v52 = vsub.f32 %v3950_v5, %v1722_v24  ;;  %v1598_v19 = vpop.permute.xlu1 %1597  ;;  %v1594_v58 = vpop.permute.xlu2 %1593 }
 0x245   : > { %1875 = vmatpush.xpose.msrb.mxu1 %v3933_v34  ;;  %v1633_v38 = vsel %vm578_vm0, %v1598_v19, 0  ;;  %v1629_v17 = vsel %vm578_vm0, %v1594_v58, 0 }
 0x246   : > { %1658 = vmatpush.xpose.msrb.mxu2 %v3897_v33  ;;  %1821 = vmatpush.xpose.msrb.mxu0 %v3944_v36  ;;  %v1724_v63 = vand.u32 4294901760, %v1723_v52  ;;  %v4004_v18 = vand.u32 4294901760, %v1633_v38  ;;  %v4024_v55 = vand.u32 4294901760, %v1629_v17 }
 0x248   : > { %1725 = vmatpush.xpose.msrb.mxu3 %v1724_v63  ;;  %v4015_v2 = vsub.f32 %v1633_v38, %v4004_v18  ;;  %v4037_v37 = vsub.f32 %v1629_v17, %v4024_v55 }
 0x249   : > { %1877 = vmatpush.xpose.msrb.mxu1 %v3946_v39 }
 0x24a   : > { %1660 = vmatpush.xpose.msrb.mxu2 %v3940_v8  ;;  %1824 = vmatpush.xpose.msrb.mxu0 %v3961_v47  ;;  %v1758_v14 = vand.u32 4294901760, %v4015_v2  ;;  %v1770_v4 = vand.u32 4294901760, %v4037_v37 }
 0x24c   : > { %1259 = vmatmul.f32.vlgmr.msra.gmra.mxu2 %v3923_v26  ;;  %1309 = vmatmul.f32.gmra.mxu3 %v1097_v21  ;;  %v1736_v26 = vand.u32 4294901760, %v1735_v22  ;;  %v1592_v6 = vpop.permute.xlu1 %1591  ;;  %v1759_v52 = vsub.f32 %v4015_v2, %v1758_v14  ;;  %v1588_v63 = vpop.permute.xlu2 %1587  ;;  %v1765_v22 = vsub.f32 %v4028_v16, %v1764_v46  ;;  %v1771_v57 = vsub.f32 %v4037_v37, %v1770_v4 }
 0x24d   : > { %1731 = vmatpush.xpose.msrb.mxu3 %v1730_v28  ;;  %1879 = vmatpush.xpose.msrb.mxu1 %v3957_v32  ;;  %v1627_v21 = vsel %vm578_vm0, %v1592_v6, 0  ;;  %v4054_v28 = vand.u32 4294901760, %v1625_v54  ;;  %v1623_v38 = vsel %vm578_vm0, %v1588_v63, 0  ;;  %v1566_v63 = vpop.permute.xlu0 %1565 }
 0x24e   : > { %1662 = vmatpush.xpose.msrb.mxu2 %v3933_v34  ;;  %1827 = vmatpush.xpose.msrb.mxu0 %v3970_v56  ;;  %v4041_v50 = vand.u32 4294901760, %v1627_v21  ;;  %v1760_v19 = vand.u32 4294901760, %v1759_v52  ;;  %v1766_v58 = vand.u32 4294901760, %v1765_v22  ;;  %v1772_v17 = vand.u32 4294901760, %v1771_v57 }
 0x24f   : > { %v4068_v48 = vsub.f32 %v1625_v54, %v4054_v28 }
 0x250   : > { %v4052_v62 = vsub.f32 %v1627_v21, %v4041_v50 }
 0x251   : > { %1737 = vmatpush.xpose.msrb.mxu3 %v1736_v26  ;;  %1881 = vmatpush.xpose.msrb.mxu1 %v3973_v11  ;;  %v4529_v6 = vand.u32 4294901760, %v4068_v48 }
 0x252   : > { %1664 = vmatpush.xpose.msrb.mxu2 %v3946_v39  ;;  %1830 = vmatpush.xpose.msrb.mxu0 %v3985_v20  ;;  %v1776_v26 = vand.u32 4294901760, %v4052_v62 }
 0x253   : > { %v1783_v54 = vsub.f32 %v4068_v48, %v4529_v6 }
 0x254   : > { %1264 = vmatmul.f32.gmra.mxu2 %v3936_v9  ;;  %v1753_v9 = vsub.f32 %v4002_v13, %v1752_v27  ;;  %v1586_v40 = vpop.permute.xlu1 %1585  ;;  %v1777_v21 = vsub.f32 %v4052_v62, %v1776_v26 }
 0x255   : > { %1743 = vmatpush.xpose.msrb.mxu3 %v1742_v0  ;;  %1883 = vmatpush.xpose.msrb.mxu1 %v3987_v15  ;;  %v4070_v0 = vand.u32 4294901760, %v1623_v38  ;;  %v1621_v1 = vsel %vm578_vm0, %v1586_v40, 0  ;;  %v1784_v40 = vand.u32 4294901760, %v1783_v54 }
 0x256   : > { %1666 = vmatpush.xpose.msrb.mxu2 %v3957_v32  ;;  %1833 = vmatpush.xpose.msrb.mxu0 %v4002_v13  ;;  %v1754_v12 = vand.u32 4294901760, %v1753_v9  ;;  %v4080_v9 = vand.u32 4294901760, %v1621_v1  ;;  %v1778_v52 = vand.u32 4294901760, %v1777_v21 }
 0x259   : > { %1749 = vmatpush.xpose.msrb.mxu3 %v1748_v41  ;;  %1885 = vmatpush.xpose.msrb.mxu1 %v4004_v18  ;;  %v4078_v41 = vsub.f32 %v1623_v38, %v4070_v0 }
 0x25a   : > { %1668 = vmatpush.xpose.msrb.mxu2 %v3973_v11  ;;  %1836 = vmatpush.xpose.msrb.mxu0 %v4015_v2 }
 0x25b   : > { %v4528_v42 = vand.u32 4294901760, %v4078_v41  ;;  %v4557_v31 = vand.u32 4294901760, %v4078_v41 }
 0x25d   : > { %1755 = vmatpush.xpose.msrb.mxu3 %v1754_v12  ;;  %1887 = vmatpush.xpose.msrb.mxu1 %v4017_v7  ;;  %v4090_v12 = vsub.f32 %v1621_v1, %v4080_v9  ;;  %v1789_v57 = vsub.f32 %v4078_v41, %v4528_v42 }
 0x25e   : > { %1670 = vmatpush.xpose.msrb.mxu2 %v3987_v15  ;;  %1839 = vmatpush.xpose.msrb.mxu0 %v4028_v16 }
 0x25f   : > { %v1794_v38 = vand.u32 4294901760, %v4090_v12 }
 0x261   : > { %1761 = vmatpush.xpose.msrb.mxu3 %v1760_v19  ;;  %1889 = vmatpush.xpose.msrb.mxu1 %v4024_v55  ;;  %v1617_v19 = vsel %vm578_vm0, %v1566_v63, 0  ;;  %v1795_v21 = vsub.f32 %v4090_v12, %v1794_v38 }
 0x262   : > { %1672 = vmatpush.xpose.msrb.mxu2 %v4004_v18  ;;  %1842 = vmatpush.xpose.msrb.mxu0 %v4037_v37  ;;  %v4097_v22 = vand.u32 4294901760, %v1617_v19 }
 0x265   : > { %1767 = vmatpush.xpose.msrb.mxu3 %v1766_v58  ;;  %1891 = vmatpush.xpose.msrb.mxu1 %v4041_v50  ;;  %v1686_v58 = vsub.f32 %v1617_v19, %v4097_v22 }
 0x266   : > { %1674 = vmatpush.xpose.msrb.mxu2 %v4017_v7  ;;  %1845 = vmatpush.xpose.msrb.mxu0 %v4052_v62 }
 0x267   : > { %v1687_v1 = vand.u32 4294901760, %v1686_v58 }
 0x269   : > { %1773 = vmatpush.xpose.msrb.mxu3 %v1772_v17  ;;  %1893 = vmatpush.xpose.msrb.mxu1 %v4054_v28  ;;  %v1790_v17 = vand.u32 4294901760, %v1789_v57  ;;  %v1688_v63 = vsub.f32 %v1686_v58, %v1687_v1 }
 0x26a   : > { %1676 = vmatpush.xpose.msrb.mxu2 %v4024_v55  ;;  %1848 = vmatpush.xpose.msrb.mxu0 %v4068_v48 }
 0x26b   : > { %v1689_v6 = vand.u32 4294901760, %v1688_v63 }
 0x26d   : > { %1779 = vmatpush.xpose.msrb.mxu3 %v1778_v52  ;;  %1895 = vmatpush.xpose.msrb.mxu1 %v4070_v0  ;;  %v1568_v52 = vpop.permute.xlu2 %1567 }
 0x26e   : > { %1678 = vmatpush.xpose.msrb.mxu2 %v4041_v50  ;;  %1851 = vmatpush.xpose.msrb.mxu0 %v4078_v41  ;;  %v1619_v54 = vsel %vm578_vm0, %v1568_v52, 0 }
 0x26f   : > { %v1693_v19 = vand.u32 4294901760, %v1619_v54 }
 0x271   : > { %1785 = vmatpush.xpose.msrb.mxu3 %v1784_v40  ;;  %1897 = vmatpush.xpose.msrb.mxu1 %v4080_v9  ;;  %v1796_v40 = vand.u32 4294901760, %v1795_v21  ;;  %v1694_v42 = vsub.f32 %v1619_v54, %v1693_v19 }
 0x272   : > { %1680 = vmatpush.xpose.msrb.mxu2 %v4054_v28  ;;  %1854 = vmatpush.xpose.msrb.mxu0 %v4090_v12 }
 0x273   : > { %v1695_v57 = vand.u32 4294901760, %v1694_v42 }
 0x274   : > { %1901 = vmatmul.f32.vlgmr.msrb.gmra.mxu1 %v1687_v1 }
 0x275   : > { %1791 = vmatpush.xpose.msrb.mxu3 %v1790_v17  ;;  %1857 = vmatmul.f32.vlgmr.msrb.gmra.mxu0 %v1686_v58  ;;  %v1696_v58 = vsub.f32 %v1694_v42, %v1695_v57 }
 0x276   : > { %1682 = vmatpush.xpose.msrb.mxu2 %v4070_v0 }
 0x277   : > { %v1697_v1 = vand.u32 4294901760, %v1696_v58 }
 0x279   : > { %1797 = vmatpush.xpose.msrb.mxu3 %v1796_v40 }
 0x27a   : > { %1684 = vmatpush.xpose.msrb.mxu2 %v4080_v9 }
 0x27c   : > { %1799 = vmatmul.f32.vlgmr.msrb.gmra.mxu3 %v4097_v22  ;;  %1907 = vmatmul.f32.gmra.mxu1 %v1695_v57  ;;  %v2113_v57 = vpop.permute.xlu0 %2112 }
 0x27d   : > { %1985 = vmatpush.xpose.msra.mxu3 %v3881_v51  ;;  %1690 = vmatmul.f32.vlgmr.msrb.gmra.mxu2 %v1689_v6  ;;  %v4556_v51 = vand.u32 4294901760, %v4068_v48  ;;  %v2115_v6 = vpop.permute.xlu1 %2114 }
 0x27e   : > { %1914 = vmatpush.xpose.msra.mxu2 %v1704_v59  ;;  %1862 = vmatmul.f32.gmra.mxu0 %v1694_v42  ;;  %v4193_v17 = vand.u32 4294901760, %v2115_v6 }
 0x281   : > { %1987 = vmatpush.xpose.msra.mxu3 %v3889_v49 }
 0x282   : > { %1918 = vmatpush.xpose.msra.mxu2 %v1710_v23 }
 0x284   : > { %1803 = vmatmul.f32.gmra.mxu3 %v1693_v19 }
 0x285   : > { %1989 = vmatpush.xpose.msra.mxu3 %v3897_v33  ;;  %1698 = vmatmul.f32.gmra.mxu2 %v1697_v1  ;;  %v4201_v1 = vsub.f32 %v2115_v6, %v4193_v17 }
 0x286   : > { %1922 = vmatpush.xpose.msra.mxu2 %v1716_v44 }
 0x289   : > { %1991 = vmatpush.xpose.msra.mxu3 %v3940_v8 }
 0x28a   : > { %1926 = vmatpush.xpose.msra.mxu2 %v1722_v24 }
 0x28d   : > { %1993 = vmatpush.xpose.msra.mxu3 %v3933_v34 }
 0x28e   : > { %1930 = vmatpush.xpose.msra.mxu2 %v1728_v43 }
 0x291   : > { %1995 = vmatpush.xpose.msra.mxu3 %v3946_v39 }
 0x292   : > { %1934 = vmatpush.xpose.msra.mxu2 %v1734_v30 }
 0x295   : > { %1997 = vmatpush.xpose.msra.mxu3 %v3957_v32 }
 0x296   : > { %1938 = vmatpush.xpose.msra.mxu2 %v1740_v10 }
 0x299   : > { %1999 = vmatpush.xpose.msra.mxu3 %v3973_v11 }
 0x29a   : > { %1942 = vmatpush.xpose.msra.mxu2 %v1746_v53 }
 0x29d   : > { %2001 = vmatpush.xpose.msra.mxu3 %v3987_v15 }
 0x29e   : > { %1946 = vmatpush.xpose.msra.mxu2 %v1752_v27 }
 0x2a1   : > { %2003 = vmatpush.xpose.msra.mxu3 %v4004_v18  ;;  %v2123_v18 = vpop.permute.xlu2 %2122 }
 0x2a2   : > { %1950 = vmatpush.xpose.msra.mxu2 %v1758_v14  ;;  %v4173_v27 = vand.u32 4294901760, %v2123_v18 }
 0x2a4   : > { %v4176_v2 = vsub.f32 %v2123_v18, %v4173_v27  ;;  %2141 = vmatpush.msra.mxu0 %v4173_v27  ;;  %v2065_v18 = vld [vmem:[%s3662_s18 + $0x28] sm:$0xff] }
 0x2a5   : > { %2005 = vmatpush.xpose.msra.mxu3 %v4017_v7 }
 0x2a6   : > { %1954 = vmatpush.xpose.msra.mxu2 %v1764_v46  ;;  %v2191_v7 = vand.u32 4294901760, %v4176_v2 }
 0x2a8   : > { %v2192_v14 = vsub.f32 %v4176_v2, %v2191_v7 }
 0x2a9   : > { %2007 = vmatpush.xpose.msra.mxu3 %v4024_v55  ;;  %v2121_v16 = vpop.permute.xlu2 %2120 }
 0x2aa   : > { %1958 = vmatpush.xpose.msra.mxu2 %v1770_v4  ;;  %v2193_v46 = vand.u32 4294901760, %v2192_v14  ;;  %v3001_v14 = vld [vmem:[%s3662_s18 + $0x8] sm:$0xff] }
 0x2ac   : > { %2194 = vmatpush.msra.mxu1 %v2193_v46 }
 0x2ad   : > { %2009 = vmatpush.xpose.msra.mxu3 %v4041_v50  ;;  %v4182_v50 = vand.u32 4294901760, %v2121_v16 }
 0x2ae   : > { %1962 = vmatpush.xpose.msra.mxu2 %v1776_v26 }
 0x2af   : > { %2143 = vmatpush.msra.mxu0 %v4182_v50 }
 0x2b1   : > { %2011 = vmatpush.xpose.msra.mxu3 %v4054_v28  ;;  %v1379_v8 = vpop.f32.mrf.mxu0  ;;  %v4185_v28 = vsub.f32 %v2121_v16, %v4182_v50  ;;  %v2119_v42 = vpop.permute.xlu2 %2118 }
 0x2b2   : > { %1966 = vmatpush.xpose.msra.mxu2 %v4556_v51  ;;  %v1420_v39 = vpop.f32.mrf.mxu1 }
 0x2b5   : > { %2013 = vmatpush.xpose.msra.mxu3 %v4070_v0  ;;  %v2197_v0 = vand.u32 4294901760, %v4185_v28 }
 0x2b6   : > { %1970 = vmatpush.xpose.msra.mxu2 %v4557_v31  ;;  %v4204_v31 = vand.u32 4294901760, %v2113_v57 }
 0x2b7   : > { %v1202_v49 = vpop.f32.mrf.mxu3  ;;  %v2198_v41 = vsub.f32 %v4185_v28, %v2197_v0 }
 0x2b9   : > { %2015 = vmatpush.xpose.msra.mxu3 %v4080_v9  ;;  %v2199_v21 = vand.u32 4294901760, %v2198_v41 }
 0x2ba   : > { %1974 = vmatpush.xpose.msra.mxu2 %v1794_v38  ;;  %v1383_v30 = vpop.f32.mrf.mxu0  ;;  %v1424_v20 = vpop.f32.mrf.mxu1  ;;  %v4191_v38 = vand.u32 4294901760, %v2119_v42 }
 0x2bb   : > { %2200 = vmatpush.msra.mxu1 %v2199_v21 }
 0x2bc   : > { %2017 = vmatmul.f32.vlgmr.msra.gmra.mxu3 %v4097_v22  ;;  %2145 = vmatpush.msra.mxu0 %v4191_v38 }
 0x2bd   : > { %1976 = vmatmul.f32.vlgmr.msra.gmra.mxu2 %v4097_v22  ;;  %2472 = vmatpush.msrb.mxu3 %v4173_v27 }
 0x2be   : > { %2401 = vmatpush.msrb.mxu2 %v2191_v7  ;;  %v2064_v7 = vld [vmem:[%s3662_s18 + $0x20] sm:$0xff] }
 0x2bf   : > { %v1093_v25 = vpop.f32.mrf.mxu2  ;;  %v1206_v33 = vpop.f32.mrf.mxu3  ;;  %2474 = vmatpush.msrb.mxu3 %v4182_v50 }
 0x2c0   : > { %v1203_v59 = vadd.f32 %v1202_v49, %v1093_v25  ;;  %2405 = vmatpush.msrb.mxu2 %v2197_v0 }
 0x2c1   : > { %2476 = vmatpush.msrb.mxu3 %v4191_v38 }
 0x2c4   : > { %2021 = vmatmul.f32.gmra.mxu3 %v1693_v19 }
 0x2c5   : > { %1980 = vmatmul.f32.gmra.mxu2 %v1693_v19  ;;  %v4196_v19 = vsub.f32 %v2119_v42, %v4191_v38 }
 0x2c7   : > { %v1101_v35 = vpop.f32.mrf.mxu2  ;;  %v1304_v23 = vpop.f32.mrf.mxu3  ;;  %v2203_v51 = vand.u32 4294901760, %v4196_v19 }
 0x2c8   : > { %v1207_v24 = vadd.f32 %v1206_v33, %v1101_v35  ;;  %v4210_v35 = vsub.f32 %v2113_v57, %v4204_v31 }
 0x2c9   : > { %2409 = vmatpush.msrb.mxu2 %v2203_v51  ;;  %v2204_v33 = vsub.f32 %v4196_v19, %v2203_v51 }
 0x2ca   : > { %v2221_v45 = vand.u32 4294901760, %v4210_v35 }
 0x2cf   : > { %v1260_v44 = vpop.f32.mrf.mxu2  ;;  %v1310_v56 = vpop.f32.mrf.mxu3 }
 0x2d0   : > { %v1261_v34 = vadd.f32 %v1260_v44, %v1203_v59  ;;  %v2117_v59 = vpop.permute.xlu2 %2116 }
 0x2d1   : > { %v4212_v44 = vand.u32 4294901760, %v2117_v59 }
 0x2d2   : > { %v1305_v36 = vadd.f32 %v1304_v23, %v1261_v34  ;;  %v2205_v34 = vand.u32 4294901760, %v2204_v33  ;;  %v3002_v33 = vld [vmem:[%s3662_s18] sm:$0xff] }
 0x2d3   : > { %2147 = vmatpush.msra.mxu0 %v4212_v44  ;;  %2478 = vmatpush.msrb.mxu3 %v4212_v44 }
 0x2d4   : > { %v1380_v5 = vadd.f32 %v1379_v8, %v1305_v36  ;;  %v2215_v8 = vand.u32 4294901760, %v4201_v1  ;;  %2206 = vmatpush.msra.mxu1 %v2205_v34 }
 0x2d5   : > { %2149 = vmatpush.msra.mxu0 %v4193_v17  ;;  %2480 = vmatpush.msrb.mxu3 %v4193_v17 }
 0x2d6   : > { %v1421_v32 = vadd.f32 %v1420_v39, %v1380_v5  ;;  %v4216_v5 = vsub.f32 %v2117_v59, %v4212_v44 }
 0x2d7   : > { %v1265_v43 = vpop.f32.mrf.mxu2  ;;  %2151 = vmatpush.msra.mxu0 %v4204_v31  ;;  %2482 = vmatpush.msrb.mxu3 %v4204_v31 }
 0x2d8   : > { %v1266_v47 = vadd.f32 %v1265_v43, %v1207_v24  ;;  %1427 = vst.msk [vmem:[%s4167_s23] sm:$0xff] %vm578_vm0, %v1421_v32  ;;  %v2209_v43 = vand.u32 4294901760, %v4216_v5 }
 0x2da   : > { %v1311_v11 = vadd.f32 %v1310_v56, %v1266_v47  ;;  %v2216_v47 = vsub.f32 %v4201_v1, %v2215_v8  ;;  %2413 = vmatpush.msrb.mxu2 %v2209_v43 }
 0x2dc   : > { %v1384_v10 = vadd.f32 %v1383_v30, %v1311_v11  ;;  %v2210_v11 = vsub.f32 %v4216_v5, %v2209_v43  ;;  %v2222_v30 = vsub.f32 %v4210_v35, %v2221_v45  ;;  %2417 = vmatpush.msrb.mxu2 %v2215_v8 }
 0x2de   : > { %v1425_v15 = vadd.f32 %v1424_v20, %v1384_v10  ;;  %v2211_v10 = vand.u32 4294901760, %v2210_v11  ;;  %v2217_v20 = vand.u32 4294901760, %v2216_v47  ;;  %2421 = vmatpush.msrb.mxu2 %v2221_v45  ;;  %v2223_v29 = vand.u32 4294901760, %v2222_v30 }
 0x2e0   : > { %1428 = vst.msk [vmem:[%s4167_s23 + $0x8] sm:$0xff] %vm578_vm0, %v1425_v15  ;;  %2212 = vmatpush.msra.mxu1 %v2211_v10  ;;  %v2068_v15 = vld [vmem:[%s3662_s18 + $0x40] sm:$0xff] }
 0x2e2   : > { %2218 = vmatpush.msra.mxu1 %v2217_v20 }
 0x2e4   : > { %2224 = vmatpush.msra.mxu1 %v2223_v29 }
 0x2f1   : > { %v1902_v26 = vpop.f32.mrf.mxu1 }
 0x2f2   : > { %v1858_v55 = vpop.f32.mrf.mxu0 }
 0x2f9   : > { %v1908_v49 = vpop.f32.mrf.mxu1 }
 0x2fb   : > { %v1863_v22 = vpop.f32.mrf.mxu0 }
 0x2ff   : > { %v1800_v53 = vpop.f32.mrf.mxu3 }
 0x300   : > { %v1691_v13 = vpop.f32.mrf.mxu2 }
 0x301   : > { %v1801_v37 = vadd.f32 %v1800_v53, %v1691_v13  ;;  %v2069_v53 = vld [vmem:[%s3662_s18 + $0x48] sm:$0xff]  ;;  %v2067_v13 = vld [vmem:[%s3662_s18 + $0x38] sm:$0xff] }
 0x303   : > { %v1859_v48 = vadd.f32 %v1858_v55, %v1801_v37  ;;  %v2063_v55 = vld [vmem:[%s3662_s18 + $0x18] sm:$0xff] }
 0x305   : > { %v1903_v12 = vadd.f32 %v1902_v26, %v1859_v48 }
 0x307   : > { %v1804_v62 = vpop.f32.mrf.mxu3 }
 0x308   : > { %v1699_v4 = vpop.f32.mrf.mxu2 }
 0x309   : > { %v1805_v9 = vadd.f32 %v1804_v62, %v1699_v4 }
 0x30b   : > { %v1864_v40 = vadd.f32 %v1863_v22, %v1805_v9 }
 0x30d   : > { %v1909_v23 = vadd.f32 %v1908_v49, %v1864_v40  ;;  %v2066_v40 = vld [vmem:[%s3662_s18 + $0x30] sm:$0xff] }
 0x33f   : > { %v2018_v54 = vpop.f32.mrf.mxu3 }
 0x340   : > { %v1977_v52 = vpop.f32.mrf.mxu2 }
 0x341   : > { %v1978_v63 = vadd.f32 %v1977_v52, %v1903_v12 }
 0x343   : > { %v2019_v58 = vadd.f32 %v2018_v54, %v1978_v63 }
 0x345   : > { %v2025_v25 = vsel %vm3604_vm3, -inf, %v2019_v58 }
 0x346   : > { %2027 = vmax.xlane.f32.xlu1 %v2025_v25 }
 0x347   : > { %v2022_v24 = vpop.f32.mrf.mxu3 }
 0x348   : > { %v1981_v36 = vpop.f32.mrf.mxu2 }
 0x349   : > { %v1982_v39 = vadd.f32 %v1981_v36, %v1909_v23 }
 0x34b   : > { %v2023_v32 = vadd.f32 %v2022_v24, %v1982_v39 }
 0x34d   : > { %v2026_v56 = vsel %vm3617_vm5, -inf, %v2023_v32 }
 0x34e   : > { %2029 = vmax.xlane.f32.xlu0 %v2026_v56 }
 0x35f   : > { %2108 = vrot.lane.b32.xlu1 %v2068_v15, %s3143_s10 }
 0x362   : > { %2110 = vrot.lane.b32.xlu0 %v2069_v53, %s3143_s10 }
 0x367   : > { %2106 = vrot.lane.b32.xlu1 %v2067_v13, %s3143_s10 }
 0x36f   : > { %2102 = vrot.lane.b32.xlu1 %v2065_v18, %s3143_s10 }
 0x377   : > { %2100 = vrot.lane.b32.xlu1 %v2064_v7, %s3143_s10 }
 0x37f   : > { %2098 = vrot.lane.b32.xlu1 %v2063_v55, %s3143_s10 }
 0x387   : > { %2094 = vrot.lane.b32.xlu1 %v3001_v14, %s3143_s10 }
 0x3b9   : > { %v2028_v16 = vpop.xlane.xlu1 %2027 }
 0x3ba   : > { %v2031_v37 = vsub.f32 %v2025_v25, %v2028_v16  ;;  %v2062_v25 = vld [vmem:[%s3662_s18 + $0x10] sm:$0xff]  ;;  %s2576_s18 = sshll.u32 %s3920_s21, 4  ;;  %s2577_s18 = int_to_ptr.vmem [resolvable:$true] %s2576_s18 }
 0x3bc   : > { %v2033_v46 = vmul.f32 1.442695, %v2031_v37 }
 0x3be   : > { %2969 = vpow2.f32 %v2033_v46 }
 0x3c1   : > { %v2030_v4 = vpop.xlane.xlu0 %2029 }
 0x3c2   : > { %v2032_v62 = vsub.f32 %v2026_v56, %v2030_v4 }
 0x3c4   : > { %v4245_v26 = vpop.eup %2969  ;;  %v2035_v48 = vmul.f32 1.442695, %v2032_v62 }
 0x3c5   : > { %2037 = vadd.xlane.f32.xlu2 %v4245_v26 }
 0x3c6   : > { %2971 = vpow2.f32 %v2035_v48 }
 0x3cc   : > { %v4248_v0 = vpop.eup %2971 }
 0x3cd   : > { %2039 = vadd.xlane.f32.xlu0 %v4248_v0 }
 0x3d1   : > { %v2109_v6 = vpop.permute.xlu1 %2108 }
 0x3d2   : > { %v4251_v41 = vand.u32 4294901760, %v2109_v6 }
 0x3d4   : > { %v2111_v9 = vpop.permute.xlu0 %2110  ;;  %v4254_v42 = vsub.f32 %v2109_v6, %v4251_v41 }
 0x3d5   : > { %v4256_v12 = vand.u32 4294901760, %v2111_v9 }
 0x3d6   : > { %v2233_v22 = vand.u32 4294901760, %v4254_v42 }
 0x3d7   : > { %v4260_v21 = vsub.f32 %v2111_v9, %v4256_v12  ;;  %2153 = vmatpush.msra.mxu0 %v4256_v12  ;;  %2484 = vmatpush.msrb.mxu3 %v4256_v12 }
 0x3d8   : > { %v2234_v63 = vsub.f32 %v4254_v42, %v2233_v22 }
 0x3d9   : > { %2155 = vmatpush.msra.mxu0 %v4251_v41  ;;  %v2227_v52 = vand.u32 4294901760, %v4260_v21  ;;  %2486 = vmatpush.msrb.mxu3 %v4251_v41  ;;  %v2107_v54 = vpop.permute.xlu1 %2106 }
 0x3da   : > { %v4269_v57 = vand.u32 4294901760, %v2107_v54  ;;  %v2235_v49 = vand.u32 4294901760, %v2234_v63 }
 0x3db   : > { %2425 = vmatpush.msrb.mxu2 %v2227_v52  ;;  %v2228_v58 = vsub.f32 %v4260_v21, %v2227_v52 }
 0x3dc   : > { %2157 = vmatpush.msra.mxu0 %v4269_v57  ;;  %2488 = vmatpush.msrb.mxu3 %v4269_v57  ;;  %v4280_v59 = vsub.f32 %v2107_v54, %v4269_v57 }
 0x3dd   : > { %2104 = vrot.lane.b32.xlu2 %v2066_v40, %s3143_s10  ;;  %v2229_v51 = vand.u32 4294901760, %v2228_v58  ;;  %2429 = vmatpush.msrb.mxu2 %v2233_v22 }
 0x3de   : > { %v2239_v23 = vand.u32 4294901760, %v4280_v59 }
 0x3df   : > { %2230 = vmatpush.msra.mxu1 %v2229_v51 }
 0x3e0   : > { %2433 = vmatpush.msrb.mxu2 %v2239_v23  ;;  %v2240_v34 = vsub.f32 %v4280_v59, %v2239_v23 }
 0x3e1   : > { %2236 = vmatpush.msra.mxu1 %v2235_v49  ;;  %v2103_v36 = vpop.permute.xlu1 %2102 }
 0x3e2   : > { %v2241_v8 = vand.u32 4294901760, %v2240_v34  ;;  %v4284_v32 = vand.u32 4294901760, %v2103_v36 }
 0x3e4   : > { %2242 = vmatpush.msra.mxu1 %v2241_v8  ;;  %v4289_v11 = vsub.f32 %v2103_v36, %v4284_v32 }
 0x3e5   : > { %2096 = vrot.lane.b32.xlu2 %v2062_v25, %s3143_s10 }
 0x3e6   : > { %v2251_v14 = vand.u32 4294901760, %v4289_v11 }
 0x3e8   : > { %v2252_v9 = vsub.f32 %v4289_v11, %v2251_v14 }
 0x3e9   : > { %v2101_v39 = vpop.permute.xlu1 %2100 }
 0x3ea   : > { %v4286_v43 = vand.u32 4294901760, %v2101_v39  ;;  %v2253_v34 = vand.u32 4294901760, %v2252_v9 }
 0x3ec   : > { %v4294_v15 = vsub.f32 %v2101_v39, %v4286_v43 }
 0x3ed   : > { %2092 = vrot.lane.b32.xlu2 %v3002_v33, %s3143_s10 }
 0x3ee   : > { %v2257_v4 = vand.u32 4294901760, %v4294_v15 }
 0x3f0   : > { %v2258_v51 = vsub.f32 %v4294_v15, %v2257_v4 }
 0x3f1   : > { %v2099_v45 = vpop.permute.xlu1 %2098 }
 0x3f2   : > { %v4291_v30 = vand.u32 4294901760, %v2099_v45 }
 0x3f4   : > { %v4304_v55 = vsub.f32 %v2099_v45, %v4291_v30  ;;  %v2259_v45 = vand.u32 4294901760, %v2258_v51 }
 0x3f6   : > { %v2263_v22 = vand.u32 4294901760, %v4304_v55 }
 0x3f8   : > { %v2264_v8 = vsub.f32 %v4304_v55, %v2263_v22 }
 0x3f9   : > { %v2095_v47 = vpop.permute.xlu1 %2094 }
 0x3fa   : > { %v4298_v13 = vand.u32 4294901760, %v2095_v47 }
 0x3fc   : > { %v4313_v46 = vsub.f32 %v2095_v47, %v4298_v13 }
 0x3fe   : > { %v2275_v49 = vand.u32 4294901760, %v4313_v46 }
 0x400   : > { %v2276_v47 = vsub.f32 %v4313_v46, %v2275_v49 }
 0x438   : > { %v2038_v24 = vpop.xlane.xlu2 %2037 }
 0x439   : > { %2973 = vrcp.f32 %v2038_v24 }
 0x43f   : > { %v2974_v56 = vpop.eup %2973 }
 0x440   : > { %v2043_v10 = vmul.f32 %v2974_v56, %v2038_v24  ;;  %v2105_v20 = vpop.permute.xlu2 %2104  ;;  %v2040_v29 = vpop.xlane.xlu0 %2039 }
 0x441   : > { %v4296_v53 = vand.u32 4294901760, %v2105_v20  ;;  %2975 = vrcp.f32 %v2040_v29 }
 0x442   : > { %v2045_v18 = vsub.f32 2.0, %v2043_v10 }
 0x443   : > { %v4301_v7 = vsub.f32 %v2105_v20, %v4296_v53  ;;  %2159 = vmatpush.msra.mxu0 %v4296_v53  ;;  %2490 = vmatpush.msrb.mxu3 %v4296_v53 }
 0x444   : > { %v2047_v16 = vmul.f32 %v2974_v56, %v2045_v18 }
 0x445   : > { %2161 = vmatpush.msra.mxu0 %v4284_v32  ;;  %2492 = vmatpush.msrb.mxu3 %v4284_v32  ;;  %v2245_v37 = vand.u32 4294901760, %v4301_v7 }
 0x446   : > { %v2049_v62 = vmul.f32 %v2047_v16, %v2038_v24 }
 0x447   : > { %v2976_v48 = vpop.eup %2975  ;;  %2163 = vmatpush.msra.mxu0 %v4286_v43  ;;  %2437 = vmatpush.msrb.mxu2 %v2245_v37  ;;  %v2246_v6 = vsub.f32 %v4301_v7, %v2245_v37 }
 0x448   : > { %v2051_v52 = vsub.f32 2.0, %v2049_v62  ;;  %v2044_v54 = vmul.f32 %v2976_v48, %v2040_v29  ;;  %2494 = vmatpush.msrb.mxu3 %v4286_v43  ;;  %v2097_v63 = vpop.permute.xlu2 %2096  ;;  %v2277_v62 = vand.u32 4294901760, %v2276_v47 }
 0x449   : > { %v4321_v40 = vand.u32 4294901760, %v2097_v63  ;;  %2165 = vmatpush.msra.mxu0 %v4291_v30  ;;  %2441 = vmatpush.msrb.mxu2 %v2251_v14  ;;  %v2247_v58 = vand.u32 4294901760, %v2246_v6 }
 0x44a   : > { %v2053_v25 = vmul.f32 %v2051_v52, %v2047_v16  ;;  %v2046_v33 = vsub.f32 2.0, %v2044_v54  ;;  %2496 = vmatpush.msrb.mxu3 %v4291_v30 }
 0x44b   : > { %v4328_v23 = vsub.f32 %v2097_v63, %v4321_v40  ;;  %2167 = vmatpush.msra.mxu0 %v4321_v40  ;;  %2248 = vmatpush.msra.mxu1 %v2247_v58 }
 0x44c   : > { %v2055_v36 = vmul.f32 %v4245_v26, %v2053_v25  ;;  %v2048_v39 = vmul.f32 %v2976_v48, %v2046_v33  ;;  %2445 = vmatpush.msrb.mxu2 %v2257_v4  ;;  %2498 = vmatpush.msrb.mxu3 %v4321_v40  ;;  %v2265_v26 = vand.u32 4294901760, %v2264_v8 }
 0x44d   : > { %2254 = vmatpush.msra.mxu1 %v2253_v34  ;;  %v2269_v24 = vand.u32 4294901760, %v4328_v23  ;;  %2169 = vmatpush.msra.mxu0 %v4298_v13 }
 0x44e   : > { %v2050_v56 = vmul.f32 %v2048_v39, %v2040_v29  ;;  %2449 = vmatpush.msrb.mxu2 %v2263_v22  ;;  %2500 = vmatpush.msrb.mxu3 %v4298_v13  ;;  %v2172_v10 = vand.u32 4294901760, %v2055_v36  ;;  %2859 = vst [vmem:[%s3920_s21 + $0x10] sm:$0xff] %v2055_v36 }
 0x44f   : > { %2260 = vmatpush.msra.mxu1 %v2259_v45  ;;  %v2270_v20 = vsub.f32 %v4328_v23, %v2269_v24 }
 0x450   : > { %v2052_v18 = vsub.f32 2.0, %v2050_v56  ;;  %2453 = vmatpush.msrb.mxu2 %v2269_v24  ;;  %v2093_v14 = vpop.permute.xlu2 %2092  ;;  %v4340_v16 = vsub.f32 %v2055_v36, %v2172_v10 }
 0x451   : > { %v4342_v37 = vand.u32 4294901760, %v2093_v14  ;;  %2266 = vmatpush.msra.mxu1 %v2265_v26  ;;  %v2271_v4 = vand.u32 4294901760, %v2270_v20 }
 0x452   : > { %v2054_v29 = vmul.f32 %v2052_v18, %v2048_v39  ;;  %2457 = vmatpush.msrb.mxu2 %v2275_v49  ;;  %v2174_v48 = vand.u32 4294901760, %v4340_v16 }
 0x453   : > { %v2280_v6 = vsub.f32 %v2093_v14, %v4342_v37  ;;  %2171 = vmatpush.msra.mxu0 %v4342_v37  ;;  %2272 = vmatpush.msra.mxu1 %v2271_v4 }
 0x454   : > { %v2056_v9 = vmul.f32 %v4248_v0, %v2054_v29  ;;  %2502 = vmatpush.msrb.mxu3 %v4342_v37  ;;  %v2175_v22 = vsub.f32 %v4340_v16, %v2174_v48 }
 0x455   : > { %2296 = vmatpush.msrb.mxu0 %v4176_v2  ;;  %2504 = vmatmul.f32.vlgmr.msrb.gmra.mxu3 %v2172_v10  ;;  %v2281_v52 = vand.u32 4294901760, %v2280_v6 }
 0x456   : > { %2278 = vmatpush.msra.mxu1 %v2277_v62  ;;  %v2176_v54 = vand.u32 4294901760, %v2175_v22  ;;  %v2180_v63 = vand.u32 4294901760, %v2056_v9  ;;  %2860 = vst [vmem:[%s3920_s21 + $0x18] sm:$0xff] %v2056_v9 }
 0x457   : > { %2299 = vmatpush.msrb.mxu0 %v4185_v28  ;;  %2461 = vmatpush.msrb.mxu2 %v2281_v52  ;;  %v2282_v58 = vsub.f32 %v2280_v6, %v2281_v52  ;;  %v3144_v52 = vmov 0  }
 0x458   : > { %2177 = vmatmul.f32.vlgmr.msra.gmra.mxu0 %v2176_v54  ;;  %2463 = vmatmul.f32.vlgmr.msrb.gmra.mxu2 %v2172_v10  ;;  %v2181_v0 = vsub.f32 %v2056_v9, %v2180_v63 }
 0x459   : > { %2302 = vmatpush.msrb.mxu0 %v4196_v19  ;;  %v2283_v2 = vand.u32 4294901760, %v2282_v58  ;;  %2953 = vset.pattern.permute.xlu1 %v3144_v52 }
 0x45a   : > { %v2182_v51 = vand.u32 4294901760, %v2181_v0  ;;  %2952 = vset.pattern.permute.xlu0 %v3144_v52 }
 0x45b   : > { %2305 = vmatpush.msrb.mxu0 %v4216_v5  ;;  %2284 = vmatpush.msra.mxu1 %v2283_v2 }
 0x45c   : > { %2286 = vmatmul.f32.vlgmr.msra.gmra.mxu1 %v2172_v10  ;;  %v2183_v49 = vsub.f32 %v2181_v0, %v2182_v51 }
 0x45d   : > { %2308 = vmatpush.msrb.mxu0 %v4201_v1  ;;  %2354 = vmatpush.msrb.mxu1 %v4173_v27  ;;  %v454_v27 = vld [vmem:[%s416_s17 + $0x8] sm:$0xff] }
 0x45e   : > { %2508 = vmatmul.f32.gmra.mxu3 %v2180_v63  ;;  %v2184_v28 = vand.u32 4294901760, %v2183_v49 }
 0x45f   : > { %2311 = vmatpush.msrb.mxu0 %v4210_v35  ;;  %2356 = vmatpush.msrb.mxu1 %v4182_v50  ;;  %v2848_v50 = vmul.f32 -5.0, %v454_v27 }
 0x460   : > { %2185 = vmatmul.f32.gmra.mxu0 %v2184_v28  ;;  %2467 = vmatmul.f32.gmra.mxu2 %v2180_v63 }
 0x461   : > { %2314 = vmatpush.msrb.mxu0 %v4260_v21  ;;  %2358 = vmatpush.msrb.mxu1 %v4191_v38  ;;  %v453_v38 = vld [vmem:[%s416_s17] sm:$0xff]  ;;  %s2575_s17 = scalar_lea.hbm %s4517_s5, %s4533_s22 }
 0x462   : > { %v2847_v19 = vmul.f32 -5.0, %v453_v38  ;;  %s2578_s19 = sshll.u32 %s2575_s17, 4  ;;  %s2579_s19 = int_to_ptr.hbm [resolvable:$true] %s2578_s19 }
 0x463   : > { %2317 = vmatpush.msrb.mxu0 %v4254_v42  ;;  %2360 = vmatpush.msrb.mxu1 %v4212_v44 }
 0x464   : > { %2290 = vmatmul.f32.gmra.mxu1 %v2180_v63  ;;  %v459_v1 = vmul.f32 1.442695, %v2847_v19 }
 0x465   : > { %2320 = vmatpush.msrb.mxu0 %v4280_v59  ;;  %2362 = vmatpush.msrb.mxu1 %v4193_v17  ;;  %v461_v17 = vmul.f32 1.442695, %v2848_v50 }
 0x467   : > { %2323 = vmatpush.msrb.mxu0 %v4301_v7  ;;  %2364 = vmatpush.msrb.mxu1 %v4204_v31  ;;  %2977 = vpow2.f32 %v461_v17 }
 0x468   : > { %2979 = vpow2.f32 %v459_v1 }
 0x469   : > { %2326 = vmatpush.msrb.mxu0 %v4289_v11  ;;  %2366 = vmatpush.msrb.mxu1 %v4256_v12 }
 0x46b   : > { %2329 = vmatpush.msrb.mxu0 %v4294_v15  ;;  %2368 = vmatpush.msrb.mxu1 %v4251_v41 }
 0x46d   : > { %2332 = vmatpush.msrb.mxu0 %v4304_v55  ;;  %2370 = vmatpush.msrb.mxu1 %v4269_v57  ;;  %v2978_v31 = vpop.eup %2977 }
 0x46e   : > { %v464_v35 = vadd.f32 1.0, %v2978_v31  ;;  %v2980_v44 = vpop.eup %2979 }
 0x46f   : > { %2335 = vmatpush.msrb.mxu0 %v4328_v23  ;;  %2372 = vmatpush.msrb.mxu1 %v4296_v53  ;;  %v463_v5 = vadd.f32 1.0, %v2980_v44 }
 0x470   : > { %2981 = vrcp.f32 %v464_v35  ;;  %v491_v59 = vand.u32 2147483648, %v464_v35  ;;  %vm485_vm6 = vweird.f32 %v464_v35 }
 0x471   : > { %2338 = vmatpush.msrb.mxu0 %v4313_v46  ;;  %2374 = vmatpush.msrb.mxu1 %v4284_v32  ;;  %2983 = vrcp.f32 %v463_v5  ;;  %vm470_vm10 = vweird.f32 %v463_v5  ;;  %v474_v33 = vand.u32 2147483647, %v463_v5 }
 0x472   : > { %v492_v11 = vor.u32 1.1754944e-38, %v491_v59 }
 0x473   : > { %2341 = vmatpush.msrb.mxu0 %v2280_v6  ;;  %2376 = vmatpush.msrb.mxu1 %v4286_v43  ;;  %v489_v43 = vand.u32 2147483647, %v464_v35  ;;  %vm475_vm13 = vcmp.eq.f32.partialorder %v474_v33, 8.507059e+37 }
 0x474   : > { %2344 = vmatmul.f32.vlgmr.msrb.gmra.mxu0 %v4340_v16 }
 0x475   : > { %2378 = vmatpush.msrb.mxu1 %v4291_v30  ;;  %vm490_vm9 = vcmp.eq.f32.partialorder %v489_v43, 8.507059e+37 }
 0x476   : > { %v2982_v41 = vpop.eup %2981 }
 0x477   : > { %2380 = vmatpush.msrb.mxu1 %v4321_v40  ;;  %v481_v42 = vmul.f32 %v2982_v41, %v464_v35  ;;  %v2984_v21 = vpop.eup %2983  ;;  %vm486_vm7 = vweird.f32 %v2982_v41  ;;  %v476_v40 = vand.u32 2147483648, %v463_v5 }
 0x478   : > { %vm487_vm8 = vmor %vm485_vm6, %vm486_vm7  ;;  %v466_v30 = vmul.f32 %v2984_v21, %v463_v5  ;;  %vm471_vm11 = vweird.f32 %v2984_v21 }
 0x479   : > { %2382 = vmatpush.msrb.mxu1 %v4298_v13  ;;  %v482_v12 = vsub.f32 1.0, %v481_v42  ;;  %vm472_vm12 = vmor %vm470_vm10, %vm471_vm11  ;;  %v477_v34 = vor.u32 1.1754944e-38, %v476_v40 }
 0x47a   : > { %v467_v13 = vsub.f32 1.0, %v466_v30 }
 0x47b   : > { %2384 = vmatpush.msrb.mxu1 %v4342_v37  ;;  %v483_v57 = vmul.f32 %v2982_v41, %v482_v12 }
 0x47c   : > { %2349 = vmatmul.f32.gmra.mxu0 %v2181_v0  ;;  %2388 = vmatmul.f32.vlgmr.msrb.gmra.mxu1 %v2174_v48  ;;  %v468_v55 = vmul.f32 %v2984_v21, %v467_v13 }
 0x47d   : > { %v484_v32 = vadd.f32 %v2982_v41, %v483_v57 }
 0x47e   : > { %v469_v25 = vadd.f32 %v2984_v21, %v468_v55 }
 0x47f   : > { %v488_v15 = vsel %vm487_vm8, %v2982_v41, %v484_v32 }
 0x480   : > { %v493_v53 = vsel %vm490_vm9, %v492_v11, %v488_v15  ;;  %v473_v8 = vsel %vm472_vm12, %v2984_v21, %v469_v25 }
 0x481   : > { %v496_v7 = vadd.f32 1e-05, %v493_v53  ;;  %v478_v36 = vsel %vm475_vm13, %v477_v34, %v473_v8 }
 0x482   : > { %v495_v39 = vadd.f32 1e-05, %v478_v36 }
 0x483   : > { %v498_v46 = vmul.f32 1.0986123, %v496_v7 }
 0x484   : > { %2394 = vmatmul.f32.gmra.mxu1 %v2182_v51  ;;  %v497_v45 = vmul.f32 1.0986123, %v495_v39  ;;  %v3145_v51 = vmov 1  }
 0x485   : > { %v501_v23 = vmul.f32 1.442695, %v498_v46  ;;  %2954 = vset.pattern.permute.xlu2 %v3145_v51 }
 0x486   : > { %v499_v24 = vmul.f32 1.442695, %v497_v45 }
 0x487   : > { %2985 = vpow2.f32 %v501_v23 }
 0x488   : > { %2987 = vpow2.f32 %v499_v24 }
 0x48d   : > { %v2986_v47 = vpop.eup %2985 }
 0x48e   : > { %v4392_v56 = vadd.f32 -1.0, %v2986_v47  ;;  %v2988_v10 = vpop.eup %2987 }
 0x48f   : > { %v4395_v26 = vadd.f32 -1.0, %v2988_v10 }
 0x490   : > { %2989 = vrcp.f32 %v4392_v56 }
 0x491   : > { %2991 = vrcp.f32 %v4395_v26 }
 0x496   : > { %v2990_v20 = vpop.eup %2989 }
 0x497   : > { %v508_v18 = vmul.f32 %v2990_v20, %v4392_v56  ;;  %v2992_v37 = vpop.eup %2991 }
 0x498   : > { %v507_v62 = vmul.f32 %v2992_v37, %v4395_v26 }
 0x499   : > { %v510_v14 = vsub.f32 2.0, %v508_v18 }
 0x49a   : > { %v509_v48 = vsub.f32 2.0, %v507_v62 }
 0x49b   : > { %v512_v16 = vmul.f32 %v2990_v20, %v510_v14 }
 0x49c   : > { %v511_v9 = vmul.f32 %v2992_v37, %v509_v48 }
 0x49d   : > { %v514_v4 = vmul.f32 %v4392_v56, %v512_v16 }
 0x49e   : > { %v513_v54 = vmul.f32 %v4395_v26, %v511_v9 }
 0x49f   : > { %v516_v29 = vsub.f32 2.0, %v514_v4 }
 0x4a0   : > { %v515_v58 = vsub.f32 2.0, %v513_v54 }
 0x4a1   : > { %v518_v6 = vmul.f32 %v516_v29, %v512_v16 }
 0x4a2   : > { %v517_v0 = vmul.f32 %v515_v58, %v511_v9 }
 0x4a3   : > { %v522_v22 = vmul.f32 %v518_v6, %v518_v6  ;;  %v520_v27 = vmul.f32 0.3989423, %v518_v6 }
 0x4a4   : > { %v521_v2 = vmul.f32 %v517_v0, %v517_v0  ;;  %v519_v28 = vmul.f32 0.3989423, %v517_v0 }
 0x4a5   : > { %v524_v63 = vmul.f32 -0.5, %v522_v22 }
 0x4a6   : > { %v523_v49 = vmul.f32 -0.5, %v521_v2 }
 0x4a7   : > { %532 = vperm.xlu1 %2953, %v524_v63  }
 0x4a8   : > { %527 = vperm.xlu0 %2952, %v523_v49   ;;  %1503 = vperm.xlu2 %2954, %v523_v49  }
 0x4af   : > { %2955 = vset.pattern.permute.xlu1 %v3145_v51 }
 0x4b0   : > { %1508 = vperm.xlu1 %2955, %v524_v63   ;;  %2956 = vset.pattern.permute.xlu2 %v3144_v52 }
 0x4b1   : > { %1536 = vrot.lane.b32.xlu0 %v4392_v56, %s4532_s20  ;;  %543 = vperm.xlu2 %2956, %v519_v28   ;;  %s3017_s20 = sshra.s32 %s2579_s19, 4  ;;  %s3018_s20 = int_to_ptr.hbm [resolvable:$true] %s3017_s20 }
 0x4b2   : > { %2960 = vset.pattern.permute.xlu0 %v3145_v51  ;;  %s3019_s0 = scalar_lea.hbm %s3018_s20, 32  ;;  %p3024_p1 = scmp.lt.s32.totalorder %s3018_s20, %s4517_s5 }
 0x4b3   : > { %p3020_p12 = scmp.ne.s32.totalorder %s3018_s20, %s3019_s0  ;;  %p3025_p2 = scmp.lt.s32.totalorder %s3023_s12, %s3019_s0 }
 0x4b5   : > { %p3021_p13 = pnand %p3020_p12, %p3232_p4  ;;  %p3026_p3 = por %p3025_p2, %p3024_p1 }
 0x4b7   : > { %p3022_p0 = pneg %p3021_p13 }
 0x4b8   : > { %2957 = vset.pattern.permute.xlu1 %v3144_v52 }
 0x4b9   : > { %548 = vperm.xlu1 %2957, %v520_v27   ;;  %2958 = vset.pattern.permute.xlu2 %v3145_v51  ;;  %p3027_p5 = pnand %p3026_p3, %p3022_p0 }
 0x4ba   : > { %1519 = vperm.xlu2 %2958, %v519_v28  }
 0x4c1   : > { %2959 = vset.pattern.permute.xlu1 %v3145_v51 }
 0x4c2   : > { %1524 = vperm.xlu1 %2959, %v520_v27  }
 0x4d5   : > { %v2178_v50 = vpop.f32.mrf.mxu0 }
 0x4d8   : > { %v2505_v42 = vpop.f32.mrf.mxu3 }
 0x4d9   : > { %v2287_v38 = vpop.f32.mrf.mxu1 }
 0x4da   : > { %v2288_v31 = vadd.f32 %v2287_v38, %v2178_v50 }
 0x4db   : > { %v2464_v44 = vpop.f32.mrf.mxu2 }
 0x4dd   : > { %v2186_v17 = vpop.f32.mrf.mxu0 }
 0x4e1   : > { %v2291_v19 = vpop.f32.mrf.mxu1 }
 0x4e2   : > { %v2292_v57 = vadd.f32 %v2291_v19, %v2186_v17 }
 0x4f1   : > { %v2345_v1 = vpop.f32.mrf.mxu0 }
 0x4f2   : > { %v2346_v35 = vadd.f32 %v2345_v1, %v2288_v31 }
 0x4f9   : > { %v2389_v5 = vpop.f32.mrf.mxu1  ;;  %v2350_v21 = vpop.f32.mrf.mxu0 }
 0x4fa   : > { %v2390_v41 = vadd.f32 %v2389_v5, %v2346_v35 }
 0x4fc   : > { %v2465_v12 = vadd.f32 %v2464_v44, %v2390_v41 }
 0x4fe   : > { %v2506_v59 = vadd.f32 %v2505_v42, %v2465_v12 }
 0x4ff   : > { %3030 = shalt.err (!%p3027_p5)
}
 0x500   : > { %s4534_s21 = smov 128   ;;  %s3148_s1 = smov 8   ;;  %v2351_v32 = vadd.f32 %v2350_v21, %v2292_v57  ;;  %v2468_v30 = vpop.f32.mrf.mxu2  ;;  %v2509_v53 = vpop.f32.mrf.mxu3  ;;  %v447_v7 = vsub.s32 %v3595_v60, %v3597_v61  ;;  %v448_v23 = vsub.s32 %v3609_v3, %v3597_v61 }
 0x501   : > { %s4558_s2 = scalar_lea.sflag [#allocation5], %s4413_s8  ;;  %s3149_s10 = smov 32   ;;  %v2395_v43 = vpop.f32.mrf.mxu1 }
 0x502   : > { %2881 = dma.vmem_to_hbm [thread:$0]  (%p3232_p4), %s2577_s18, 512, %s2579_s19, %s4558_s2, %s4534_s21, %s4534_s21, %s3148_s1   ;;  %v2396_v11 = vadd.f32 %v2395_v43, %v2351_v32  ;;  %v449_v55 = vcvt.s32.f32 %v447_v7  ;;  %v1504_v40 = vpop.permute.xlu2 %1503  ;;  %v450_v8 = vcvt.s32.f32 %v448_v23 }
 0x503   : > { %2514 = vrot.lane.b32.xlu2 %v2506_v59, %s3149_s10  ;;  %s4559_s0 = smov 127   ;;  %s4560_s2 = sshll.u32 %s3905_s16, 5 }
 0x504   : > { %v2469_v15 = vadd.f32 %v2468_v30, %v2396_v11  ;;  %v451_v46 = vmul.f32 %v449_v55, %v449_v55  ;;  %v452_v36 = vmul.f32 %v450_v8, %v450_v8  ;;  %s376_s19 = scalar_lea.vmem [#allocation6], %s4560_s2  ;;  %s4561_s20 = sshll.u32 %s3133_s27, 5 }
 0x505   : > { %s2594_s30 = scalar_lea.hbm %s4518_s6, %s4561_s20  ;;  %s2595_s12 = sshll.u32 %s376_s19, 4  ;;  %s2596_s12 = int_to_ptr.vmem [resolvable:$true] %s2595_s12 }
 0x506   : > { %v2510_v13 = vadd.f32 %v2509_v53, %v2469_v15  ;;  %v1511_v25 = vmul.f32 %v1504_v40, %v451_v46  ;;  %s2597_s17 = sshll.u32 %s2594_s30, 4  ;;  %s3051_s18 = scalar_lea.hbm %s4518_s6, 64  ;;  %s2598_s17 = int_to_ptr.hbm [resolvable:$true] %s2597_s17 }
 0x508   : > { %2516 = vrot.lane.b32.xlu1 %v2510_v13, %s3149_s10  ;;  %v1513_v33 = vmul.f32 1.442695, %v1511_v25  ;;  %s3045_s10 = sshra.s32 %s2598_s17, 4  ;;  %s3046_s10 = int_to_ptr.hbm [resolvable:$true] %s3045_s10 }
 0x509   : > { %p3052_p10 = scmp.lt.s32.totalorder %s3046_s10, %s4518_s6 }
 0x50a   : > { %2993 = vpow2.f32 %v1513_v33 }
 0x50b   : > { %1534 = vrot.lane.b32.xlu2 %v4395_v26, %s4559_s0  ;;  %v544_v34 = vpop.permute.xlu2 %543  ;;  %s3047_s0 = scalar_lea.hbm %s3046_s10, 32 }
 0x50c   : > { %p3048_p6 = scmp.ne.s32.totalorder %s3046_s10, %s3047_s0  ;;  %p3053_p11 = scmp.lt.s32.totalorder %s3051_s18, %s3047_s0 }
 0x50e   : > { %p3049_p7 = pnand %p3048_p6, %p3232_p4  ;;  %p3054_p12 = por %p3053_p11, %p3052_p10 }
 0x510   : > { %v2994_v39 = vpop.eup %2993  ;;  %p3050_p9 = pneg %p3049_p7 }
 0x512   : > { %p3055_p13 = pnand %p3054_p12, %p3050_p9 }
 0x514   : > { %v1520_v24 = vpop.permute.xlu2 %1519 }
 0x515   : > { %v1527_v47 = vmul.f32 %v2994_v39, %v1520_v24 }
 0x517   : > { %2855 = vst [vmem:[%s376_s19 + $0x10] sm:$0xff] %v1527_v47 }
 0x519   : > { %v533_v45 = vpop.permute.xlu1 %532 }
 0x51a   : > { %v536_v10 = vmul.f32 %v533_v45, %v452_v36  ;;  %v528_v20 = vpop.permute.xlu0 %527 }
 0x51b   : > { %v535_v18 = vmul.f32 %v528_v20, %v451_v46 }
 0x51c   : > { %v539_v60 = vmul.f32 1.442695, %v536_v10 }
 0x51d   : > { %v537_v16 = vmul.f32 1.442695, %v535_v18 }
 0x51e   : > { %2995 = vpow2.f32 %v539_v60 }
 0x51f   : > { %2997 = vpow2.f32 %v537_v16 }
 0x522   : > { %v1509_v14 = vpop.permute.xlu1 %1508 }
 0x523   : > { %v1512_v61 = vmul.f32 %v1509_v14, %v452_v36 }
 0x524   : > { %v2996_v37 = vpop.eup %2995 }
 0x525   : > { %v1515_v3 = vmul.f32 1.442695, %v1512_v61  ;;  %v2998_v4 = vpop.eup %2997 }
 0x526   : > { %v551_v29 = vmul.f32 %v2998_v4, %v544_v34 }
 0x527   : > { %2999 = vpow2.f32 %v1515_v3 }
 0x528   : > { %553 = vst [vmem:[%s376_s19] sm:$0xff] %v551_v29 }
 0x52b   : > { %v549_v62 = vpop.permute.xlu1 %548 }
 0x52c   : > { %v552_v48 = vmul.f32 %v2996_v37, %v549_v62 }
 0x52d   : > { %v3000_v6 = vpop.eup %2999 }
 0x52e   : > { %554 = vst [vmem:[%s376_s19 + $0x8] sm:$0xff] %v552_v48 }
 0x534   : > { %v1525_v9 = vpop.permute.xlu1 %1524 }
 0x535   : > { %v1528_v22 = vmul.f32 %v3000_v6, %v1525_v9 }
 0x537   : > { %2856 = vst [vmem:[%s376_s19 + $0x18] sm:$0xff] %v1528_v22 }
 0x538   : > { %3058 = shalt.err (!%p3055_p13)
}
 0x539   : > { %s4562_s19 = smov 128   ;;  %s4563_s30 = scalar_lea.sflag [#allocation5], %s4413_s8  ;;  %vm2520_vm14 = vcmask 523520   ;;  %vm555_vm15 = vcmask 7168   ;;  %v1537_v54 = vpop.permute.xlu0 %1536 }
 0x53a   : > { %2882 = dma.vmem_to_hbm [thread:$0]  (%p3232_p4), %s2596_s12, 512, %s2598_s17, %s4563_s30, %s4562_s19, %s4562_s19, %s3148_s1  }
 0x53b   : > { %s2876_s21 = sshll.u32 %s3251_s15, 5  ;;  %s2877_s8 = sshll.u32 %s3133_s27, 4 }
 0x53c   : > { %s429_s0 = scalar_lea.vmem %s4519_s7, %s2876_s21  ;;  %s2556_s17 = scalar_lea.hbm %s4516_s4, %s2877_s8 }
 0x53d   : > { %556 = vst.msk [vmem:[%s429_s0] sm:$0xff] %vm555_vm15, %v4395_v26  ;;  %s2557_s18 = sshll.u32 %s4167_s23, 4  ;;  %s2559_s20 = sshll.u32 %s2556_s17, 4  ;;  %s2558_s18 = int_to_ptr.vmem [resolvable:$true] %s2557_s18  ;;  %s2560_s20 = int_to_ptr.hbm [resolvable:$true] %s2559_s20 }
 0x53e   : > { %557 = vst.msk [vmem:[%s429_s0 + $0x8] sm:$0xff] %vm555_vm15, %v4392_v56  ;;  %s2524_s22 = scalar_lea.sflag [#allocation3], %s3905_s16  ;;  %s3073_s30 = sshra.s32 %s2560_s20, 4  ;;  %s3074_s30 = int_to_ptr.hbm [resolvable:$true] %s3073_s30 }
 0x53f   : > { %2858 = vst.msk [vmem:[%s429_s0 + $0x18] sm:$0xff] %vm555_vm15, %v1537_v54  ;;  %s3075_s21 = scalar_lea.hbm %s3074_s30, 16  ;;  %s3079_s10 = scalar_lea.hbm %s4516_s4, 32 }
 0x540   : > { %p3076_p0 = scmp.ne.s32.totalorder %s3074_s30, %s3075_s21  ;;  %p3080_p3 = scmp.lt.s32.totalorder %s3074_s30, %s4516_s4 }
 0x541   : > { %p3081_p5 = scmp.lt.s32.totalorder %s3079_s10, %s3075_s21 }
 0x542   : > { %p3077_p1 = pnand %p3076_p0, %p3232_p4 }
 0x543   : > { %p3082_p6 = por %p3081_p5, %p3080_p3 }
 0x544   : > { %p3078_p2 = pneg %p3077_p1 }
 0x546   : > { %p3083_p7 = pnand %p3082_p6, %p3078_p2 }
 0x55d   : > { %v2515_v52 = vpop.permute.xlu2 %2514 }
 0x55e   : > { %2521 = vst.msk [vmem:[%s4167_s23] sm:$0xff] %vm2520_vm14, %v2515_v52 }
 0x565   : > { %v1535_v63 = vpop.permute.xlu2 %1534 }
 0x566   : > { %2857 = vst.msk [vmem:[%s429_s0 + $0x10] sm:$0xff] %vm555_vm15, %v1535_v63 }
 0x57a   : > { %v2517_v58 = vpop.permute.xlu1 %2516 }
 0x57b   : > { %2522 = vst.msk [vmem:[%s4167_s23 + $0x8] sm:$0xff] %vm2520_vm14, %v2517_v58 }
 0x57c   : > { %3086 = shalt.err (!%p3083_p7)
}
 0x57d   : > { %2880 = dma.vmem_to_hbm [thread:$0]  (%p3232_p4), %s2558_s18, 256, %s2560_s20, %s2524_s22, %s4562_s19, %s4562_s19, %s3148_s1  }
 0x57e PF: > { %p2896_p9 = scmp.ge.s32.totalorder %s3141_s29, 2  ;;  %s2616_s16 = sand.u32 1, %s3121_s24  }
 0x57f   : > { %s2617_s23 = scalar_lea.sflag [#allocation3], %s2616_s16 }
 0x580   : > { %p2887_p10 = pnand %p2896_p9, %p3241_p8 }
 0x582   : > { %p2888_p11 = pneg %p2887_p10 }
 0x584   : > { %3112 = dma.done.wait (%p2888_p11), %s2617_s23, 256  }
 0x585   : > { %3114 = vsyncadd (%p2888_p11), %s2617_s23, 4294967040  ;;  %s4564_s15 = sadd.s32 4294967294, %s3141_s29  }
 0x586   : > { %s2626_s12 = sand.u32 1, %s4564_s15  }
 0x587   : > { %s2627_s11 = scalar_lea.sflag [#allocation5], %s2626_s12 }
 0x588   : > { %3116 = dma.done.wait (%p2888_p11), %s2627_s11, 1024  }
 0x589   : > { %3118 = vsyncadd (%p2888_p11), %s2627_s11, 4294966272  ;;  %s24_s29 = sadd.s32 1, %s3141_s29   ;;  %s4565_s24 = smov %s3125_s25 }
 0x58a   : > { %p21_p4 = scmp.ge.s32.totalorder %s24_s29, 4   ;;  %s4566_s25 = smov %s3129_s26 }
 0x58b   : > { %s4567_s26 = smov %s3247_s14  ;;  %s4568_s27 = smov %s3137_s28 }
 0x58c   : > { %s4569_s28 = smov %s4571_s9  ;;  %23 = sbr.rel (!%p21_p4) target bundleno = 10 (0xa), region = 127 }
 0x591   :  { %2655 = vsyncpa [#allocation3], 1 }
 0x592   :  { %2657 = vsyncpa [#allocation3 + $0x1], 1 }
 0x593   :  { %2658 = vsyncpa [#allocation5], 1 }
 0x594   :  { %2660 = vsyncpa [#allocation5 + $0x1], 1 }

</bundles_post_ra>
